<compile_context>
chip_gen: v5e
topology: v5e:2x2
jax: 0.10.0
libtpu: 0.0.40
codegen_flags: <defaults>
</compile_context>

<pallas_src>
import math

import jax
import jax.numpy as jnp
from jax import lax
from jax.experimental import pallas as pl
from jax.experimental.pallas import tpu as pltpu


def _ohcnn_kernel(tok_ref, emb_ref, bias_ref, pool_ref, out_ref, acc_ref):
    # tok_ref : (M, R)        int32, M = Bt * S   (one batch tile, flattened)
    # emb_ref : (Dt, Co_pad)  f32   current vocab slice (unk row zeroed, padded)
    # bias_ref: (1, Co_pad)   f32
    # pool_ref: (n_pool, S)   f32   constant avg-pool matrix (rows sum to 1)
    # out_ref : (Bt, n_pool, Co_pad) f32
    # acc_ref : (M, Co_pad)   f32   VMEM accumulator across the vocab axis
    M, R = tok_ref.shape
    Dt, Co_pad = emb_ref.shape
    Bt, n_pool, _ = out_ref.shape
    _, S = pool_ref.shape

    k = pl.program_id(1)

    @pl.when(k == 0)
    def _init():
        acc_ref[...] = jnp.zeros_like(acc_ref)

    # Counts for the current vocab slice:
    #   cnt[m, d] = #{ r : tok[m, r] == k*Dt + d }
    # Built with a short static loop over R (R is tiny) instead of a 3-D
    # one-hot; the unk mask is unnecessary because emb row unk_idx is zero.
    tok = tok_ref[...]                                           # (M, R) int32
    d_ids = k * Dt + lax.broadcasted_iota(jnp.int32, (M, Dt), 1)  # (M, Dt)
    cnt = jnp.zeros((M, Dt), jnp.float32)
    for r in range(R):                                            # static unroll
        cnt = cnt + (tok[:, r:r + 1] == d_ids).astype(jnp.float32)

    # Partial embedding-sum for this vocab slice (MXU): acc += cnt @ emb_slice
    acc_ref[...] += jnp.dot(cnt, emb_ref[...],
                            preferred_element_type=jnp.float32)

    @pl.when(k == pl.num_programs(1) - 1)
    def _finalize():
        # relu(sum_r embed[tok] + bias)
        h = jnp.maximum(acc_ref[...] + bias_ref[...], 0.0)        # (M, Co_pad)
        P = pool_ref[...]                                         # (n_pool, S)
        for b in range(Bt):                                       # static, Bt small
            hb = h[b * S:(b + 1) * S, :]                          # (S, Co_pad)
            # avg_pool1d over the sentence axis (window == stride == S/n_pool)
            pb = jnp.dot(P, hb, preferred_element_type=jnp.float32)
            # dropout: identity (eval mode)
            # x / sqrt(1 + sum(x^2)) over all n_pool*Co elements of this row
            # (padded Co columns are exactly 0, so they do not change the sum)
            ssum = jnp.sum(pb * pb)
            out_ref[b] = pb * lax.rsqrt(1.0 + ssum)


def ohcnn_fast_forward(tok, embed_w, bias, *, unk_idx, n_pool=10,
                       dt=512, batch_tile=None):
    """tok: (B, S, R) int32; embed_w: (D, Co) f32; bias: (1, Co) f32."""
    B, S, R = tok.shape
    D, Co = embed_w.shape
    assert S % n_pool == 0, "sent_len must be divisible by n_pool"
    W = S // n_pool

    # --- batch tile: pack enough sentences per grid step to fill the MXU M dim
    if batch_tile is None:
        Bt = B
        for cand in range(1, B + 1):
            if B % cand == 0 and cand * S >= 256:
                Bt = cand
                break
    else:
        Bt = batch_tile
    assert B % Bt == 0
    assert Bt == B or (Bt * S) % 8 == 0, "batch tile must give 8-aligned rows"

    # --- pad Co to a multiple of 128 (lane-dense stores, clean MXU N dim)
    Co_pad = ((Co + 127) // 128) * 128

    # --- vocab tiling (reduction axis); Dt multiple of 8, table zero-padded
    Dt = max(8, min(dt, D))
    Dt = ((Dt + 7) // 8) * 8
    D_pad = ((D + Dt - 1) // Dt) * Dt

    # Zero the unk row once (replaces the per-element unk mask), then pad.
    emb = embed_w.at[unk_idx].set(0.0)
    emb = jnp.pad(emb, ((0, D_pad - D), (0, Co_pad - Co)))
    bias_p = jnp.pad(bias.reshape(1, Co), ((0, 0), (0, Co_pad - Co)))

    # Tokens flattened so per-step counts are a single 2-D (Bt*S, Dt) tile.
    tok_flat = tok.reshape(B * S, R)

    # Constant avg-pool matrix: P[p, s] = 1/W if s // W == p else 0.
    P = ((jnp.arange(S)[None, :] // W) == jnp.arange(n_pool)[:, None])
    P = P.astype(jnp.float32) * (1.0 / W)

    grid = (B // Bt, D_pad // Dt)
    out = pl.pallas_call(
        _ohcnn_kernel,
        out_shape=jax.ShapeDtypeStruct((B, n_pool, Co_pad), jnp.float32),
        grid=grid,
        in_specs=[
            pl.BlockSpec((Bt * S, R), lambda b, k: (b, 0)),     # token tile
            pl.BlockSpec((Dt, Co_pad), lambda b, k: (k, 0)),    # vocab slice
            pl.BlockSpec((1, Co_pad), lambda b, k: (0, 0)),     # bias
            pl.BlockSpec((n_pool, S), lambda b, k: (0, 0)),     # pool matrix
        ],
        out_specs=pl.BlockSpec((Bt, n_pool, Co_pad), lambda b, k: (b, 0, 0)),
        scratch_shapes=[pltpu.VMEM((Bt * S, Co_pad), jnp.float32)],
        compiler_params=pltpu.CompilerParams(
            dimension_semantics=("parallel", "arbitrary")),
    )(tok_flat, emb, bias_p, P)

    # PyTorch: (B, Co, n_pool).view(-1, n_pool*Co)  ->  out[b, co*n_pool + p]
    out = out[:, :, :Co]
    return out.transpose(0, 2, 1).reshape(B, Co * n_pool)


def _reference(tok, embed_w, bias, unk_idx, n_pool):
    """Pure-JAX transcription of the PyTorch forward (fc=False, eval mode)."""
    B, S, R = tok.shape
    D, Co = embed_w.shape
    x = tok.reshape(B, S * R)
    x_embed = embed_w[x]                                           # (B, S*R, Co)
    x = (x != unk_idx)[..., None].astype(jnp.float32) * x_embed
    x = x.reshape(B, S, R, Co).sum(axis=2)                         # (B, S, Co)
    x = jnp.maximum(x.transpose(0, 2, 1) + bias[:, :, None], 0.0)  # (B, Co, S)
    W = S // n_pool
    x = x.reshape(B, Co, n_pool, W).mean(axis=3)                   # (B, Co, n_pool)
    x = x.reshape(B, Co * n_pool)
    x = x / jnp.sqrt(1.0 + jnp.sum(x * x, axis=1, keepdims=True))
    return x


if __name__ == "__main__":
    # Module config — Co=1000 and n_pool=10 are hardcoded in OHCNN_fast;
    # the rest are small synthetic sizes.
    vocab_size = 128          # D
    n_classes = 8             # C (fc1 unused since fc=False)
    unk_idx = 0
    Co = 1000
    n_pool = 10
    B, S, R = 2, 40, 8        # batch, sent_len, region tokens per position

    key = jax.random.PRNGKey(0)
    k_emb, k_bias, k_tok = jax.random.split(key, 3)
    stdv = 1.0 / math.sqrt(vocab_size)
    embed_w = jax.random.uniform(k_emb, (vocab_size, Co), jnp.float32, -stdv, stdv)
    bias = jax.random.uniform(k_bias, (1, Co), jnp.float32, -stdv, stdv)
    tok = jax.random.randint(k_tok, (B, S, R), 0, vocab_size, dtype=jnp.int32)

    # dt=64 -> two vocab-reduction steps at this toy vocab, exercising the
    # accumulator / @pl.when init-finalize path.
    out = ohcnn_fast_forward(tok, embed_w, bias, unk_idx=unk_idx,
                             n_pool=n_pool, dt=64)
    jax.block_until_ready(out)

    assert out.shape == (B, Co * n_pool)
    assert out.dtype == jnp.float32

    ref = _reference(tok, embed_w, bias, unk_idx, n_pool)
    assert bool(jnp.allclose(out, ref, rtol=5e-3, atol=5e-3))

    print("KERNEL_OK")
</pallas_src>

<mosaic_0001>
module attributes {stable_mosaic.version = 11 : i64} {
  func.func @_ohcnn_kernel(%arg0: i32, %arg1: i32, %arg2: memref<80x8xi32, #tpu.memory_space<vmem>>, %arg3: memref<64x1024xf32, #tpu.memory_space<vmem>>, %arg4: memref<1x1024xf32, #tpu.memory_space<vmem>>, %arg5: memref<10x40xf32, #tpu.memory_space<vmem>>, %arg6: memref<2x10x1024xf32, #tpu.memory_space<vmem>>, %arg7: memref<80x1024xf32, #tpu.memory_space<vmem>>) attributes {dimension_semantics = [#tpu.dimension_semantics<parallel>, #tpu.dimension_semantics<arbitrary>], iteration_bounds = array<i64: 1, 2>, scalar_prefetch = 0 : i64, scratch_operands = 1 : i64, tpu.core_type = #tpu.core_type<tc>, window_params = [{transform_indices = @transform_0, window_bounds = array<i64: 80, 8>}, {transform_indices = @transform_1, window_bounds = array<i64: 64, 1024>}, {pipeline_mode = #tpu.pipeline_mode<synchronous>, transform_indices = @transform_2, window_bounds = array<i64: 1, 1024>}, {pipeline_mode = #tpu.pipeline_mode<synchronous>, transform_indices = @transform_3, window_bounds = array<i64: 10, 40>}, {transform_indices = @transform_4, window_bounds = array<i64: 2, 10, 1024>}]} {
    %c0_i32 = arith.constant 0 : i32
    %0 = arith.cmpi eq, %arg1, %c0_i32 : i32
    %1 = arith.extui %0 : i1 to i32
    %c0_i32_0 = arith.constant 0 : i32
    %2 = arith.cmpi ne, %1, %c0_i32_0 : i32
    scf.if %2 {
      %cst_10 = arith.constant 0.000000e+00 : f32
      %65 = vector.broadcast %cst_10 : f32 to vector<80x1024xf32>
      %c0_11 = arith.constant 0 : index
      %c0_12 = arith.constant 0 : index
      %66 = vector.load %arg7[%c0_11, %c0_12] : memref<80x1024xf32, #tpu.memory_space<vmem>>, vector<80x1024xf32>
      tpu.vector_store %arg7[%c0_11, %c0_12], %65 {strides = array<i32>} : memref<80x1024xf32, #tpu.memory_space<vmem>>, vector<80x1024xf32>,
    } else {
    }
    %c0 = arith.constant 0 : index
    %c0_1 = arith.constant 0 : index
    %3 = vector.load %arg2[%c0, %c0_1] : memref<80x8xi32, #tpu.memory_space<vmem>>, vector<80x8xi32>
    %c64_i32 = arith.constant 64 : i32
    %4 = arith.muli %arg1, %c64_i32 : i32
    %5 = tpu.iota {dimensions = array<i32: 1>} : vector<80x64xi32>
    %6 = vector.broadcast %4 : i32 to vector<80x64xi32>
    %7 = arith.addi %6, %5 : vector<80x64xi32>
    %cst = arith.constant 0.000000e+00 : f32
    %8 = vector.broadcast %cst : f32 to vector<80x64xf32>
    %9 = vector.extract_strided_slice %3 {offsets = [0, 0], sizes = [80, 1], strides = [1, 1]} : vector<80x8xi32> to vector<80x1xi32>
    %10 = vector.broadcast %9 : vector<80x1xi32> to vector<80x64xi32>
    %11 = arith.cmpi eq, %10, %7 : vector<80x64xi32>
    %12 = arith.extui %11 : vector<80x64xi1> to vector<80x64xi32>
    %13 = arith.sitofp %12 : vector<80x64xi32> to vector<80x64xf32>
    %14 = arith.addf %8, %13 : vector<80x64xf32>
    %15 = vector.extract_strided_slice %3 {offsets = [0, 1], sizes = [80, 1], strides = [1, 1]} : vector<80x8xi32> to vector<80x1xi32>
    %16 = vector.broadcast %15 : vector<80x1xi32> to vector<80x64xi32>
    %17 = arith.cmpi eq, %16, %7 : vector<80x64xi32>
    %18 = arith.extui %17 : vector<80x64xi1> to vector<80x64xi32>
    %19 = arith.sitofp %18 : vector<80x64xi32> to vector<80x64xf32>
    %20 = arith.addf %14, %19 : vector<80x64xf32>
    %21 = vector.extract_strided_slice %3 {offsets = [0, 2], sizes = [80, 1], strides = [1, 1]} : vector<80x8xi32> to vector<80x1xi32>
    %22 = vector.broadcast %21 : vector<80x1xi32> to vector<80x64xi32>
    %23 = arith.cmpi eq, %22, %7 : vector<80x64xi32>
    %24 = arith.extui %23 : vector<80x64xi1> to vector<80x64xi32>
    %25 = arith.sitofp %24 : vector<80x64xi32> to vector<80x64xf32>
    %26 = arith.addf %20, %25 : vector<80x64xf32>
    %27 = vector.extract_strided_slice %3 {offsets = [0, 3], sizes = [80, 1], strides = [1, 1]} : vector<80x8xi32> to vector<80x1xi32>
    %28 = vector.broadcast %27 : vector<80x1xi32> to vector<80x64xi32>
    %29 = arith.cmpi eq, %28, %7 : vector<80x64xi32>
    %30 = arith.extui %29 : vector<80x64xi1> to vector<80x64xi32>
    %31 = arith.sitofp %30 : vector<80x64xi32> to vector<80x64xf32>
    %32 = arith.addf %26, %31 : vector<80x64xf32>
    %33 = vector.extract_strided_slice %3 {offsets = [0, 4], sizes = [80, 1], strides = [1, 1]} : vector<80x8xi32> to vector<80x1xi32>
    %34 = vector.broadcast %33 : vector<80x1xi32> to vector<80x64xi32>
    %35 = arith.cmpi eq, %34, %7 : vector<80x64xi32>
    %36 = arith.extui %35 : vector<80x64xi1> to vector<80x64xi32>
    %37 = arith.sitofp %36 : vector<80x64xi32> to vector<80x64xf32>
    %38 = arith.addf %32, %37 : vector<80x64xf32>
    %39 = vector.extract_strided_slice %3 {offsets = [0, 5], sizes = [80, 1], strides = [1, 1]} : vector<80x8xi32> to vector<80x1xi32>
    %40 = vector.broadcast %39 : vector<80x1xi32> to vector<80x64xi32>
    %41 = arith.cmpi eq, %40, %7 : vector<80x64xi32>
    %42 = arith.extui %41 : vector<80x64xi1> to vector<80x64xi32>
    %43 = arith.sitofp %42 : vector<80x64xi32> to vector<80x64xf32>
    %44 = arith.addf %38, %43 : vector<80x64xf32>
    %45 = vector.extract_strided_slice %3 {offsets = [0, 6], sizes = [80, 1], strides = [1, 1]} : vector<80x8xi32> to vector<80x1xi32>
    %46 = vector.broadcast %45 : vector<80x1xi32> to vector<80x64xi32>
    %47 = arith.cmpi eq, %46, %7 : vector<80x64xi32>
    %48 = arith.extui %47 : vector<80x64xi1> to vector<80x64xi32>
    %49 = arith.sitofp %48 : vector<80x64xi32> to vector<80x64xf32>
    %50 = arith.addf %44, %49 : vector<80x64xf32>
    %51 = vector.extract_strided_slice %3 {offsets = [0, 7], sizes = [80, 1], strides = [1, 1]} : vector<80x8xi32> to vector<80x1xi32>
    %52 = vector.broadcast %51 : vector<80x1xi32> to vector<80x64xi32>
    %53 = arith.cmpi eq, %52, %7 : vector<80x64xi32>
    %54 = arith.extui %53 : vector<80x64xi1> to vector<80x64xi32>
    %55 = arith.sitofp %54 : vector<80x64xi32> to vector<80x64xf32>
    %56 = arith.addf %50, %55 : vector<80x64xf32>
    %c0_2 = arith.constant 0 : index
    %c0_3 = arith.constant 0 : index
    %57 = vector.load %arg7[%c0_2, %c0_3] : memref<80x1024xf32, #tpu.memory_space<vmem>>, vector<80x1024xf32>
    %c0_4 = arith.constant 0 : index
    %c0_5 = arith.constant 0 : index
    %58 = vector.load %arg3[%c0_4, %c0_5] : memref<64x1024xf32, #tpu.memory_space<vmem>>, vector<64x1024xf32>
    %cst_6 = arith.constant dense<0.000000e+00> : vector<80x1024xf32>
    %59 = tpu.matmul %56, %58, %cst_6 {dimension_numbers = #tpu.dot_dimension_numbers<[1], [0], [0], [1], [0, 0, 1, 1], [], []>} : vector<80x64xf32>, vector<64x1024xf32>, vector<80x1024xf32> -> vector<80x1024xf32>
    %60 = arith.addf %57, %59 : vector<80x1024xf32>
    %c0_7 = arith.constant 0 : index
    %c0_8 = arith.constant 0 : index
    %61 = vector.load %arg7[%c0_7, %c0_8] : memref<80x1024xf32, #tpu.memory_space<vmem>>, vector<80x1024xf32>
    tpu.vector_store %arg7[%c0_7, %c0_8], %60 {strides = array<i32>} : memref<80x1024xf32, #tpu.memory_space<vmem>>, vector<80x1024xf32>,
    %c1_i32 = arith.constant 1 : i32
    %62 = arith.cmpi eq, %arg1, %c1_i32 : i32
    %63 = arith.extui %62 : i1 to i32
    %c0_i32_9 = arith.constant 0 : i32
    %64 = arith.cmpi ne, %63, %c0_i32_9 : i32
    scf.if %64 {
      %c0_10 = arith.constant 0 : index
      %c0_11 = arith.constant 0 : index
      %65 = vector.load %arg7[%c0_10, %c0_11] : memref<80x1024xf32, #tpu.memory_space<vmem>>, vector<80x1024xf32>
      %c0_12 = arith.constant 0 : index
      %c0_13 = arith.constant 0 : index
      %66 = vector.load %arg4[%c0_12, %c0_13] : memref<1x1024xf32, #tpu.memory_space<vmem>>, vector<1x1024xf32>
      %67 = vector.broadcast %66 : vector<1x1024xf32> to vector<80x1024xf32>
      %68 = arith.addf %65, %67 : vector<80x1024xf32>
      %cst_14 = arith.constant 0.000000e+00 : f32
      %69 = vector.broadcast %cst_14 : f32 to vector<80x1024xf32>
      %70 = arith.maximumf %68, %69 : vector<80x1024xf32>
      %c0_15 = arith.constant 0 : index
      %c0_16 = arith.constant 0 : index
      %71 = vector.load %arg5[%c0_15, %c0_16] : memref<10x40xf32, #tpu.memory_space<vmem>>, vector<10x40xf32>
      %72 = vector.extract_strided_slice %70 {offsets = [0, 0], sizes = [40, 1024], strides = [1, 1]} : vector<80x1024xf32> to vector<40x1024xf32>
      %cst_17 = arith.constant dense<0.000000e+00> : vector<10x1024xf32>
      %73 = tpu.matmul %71, %72, %cst_17 {dimension_numbers = #tpu.dot_dimension_numbers<[1], [0], [0], [1], [0, 0, 1, 1], [], []>} : vector<10x40xf32>, vector<40x1024xf32>, vector<10x1024xf32> -> vector<10x1024xf32>
      %74 = arith.mulf %73, %73 : vector<10x1024xf32>
      %75 = vector.shape_cast %74 : vector<10x1024xf32> to vector<1x10x1024xf32>
      %cst_18 = arith.constant dense<0.000000e+00> : vector<1xf32>
      %76 = vector.multi_reduction <add>, %75, %cst_18 [1, 2] : vector<1x10x1024xf32> to vector<1xf32>
      %77 = vector.shape_cast %76 : vector<1xf32> to vector<1x1x1xf32>
      %78 = vector.extract %77[0, 0, 0] : f32 from vector<1x1x1xf32>
      %cst_19 = arith.constant 1.000000e+00 : f32
      %79 = arith.addf %cst_19, %78 : f32
      %80 = math.rsqrt %79 : f32
      %81 = vector.broadcast %80 : f32 to vector<10x1024xf32>
      %82 = arith.mulf %73, %81 : vector<10x1024xf32>
      %c0_20 = arith.constant 0 : index
      %c0_21 = arith.constant 0 : index
      %c0_22 = arith.constant 0 : index
      %83 = vector.load %arg6[%c0_20, %c0_21, %c0_22] : memref<2x10x1024xf32, #tpu.memory_space<vmem>>, vector<1x10x1024xf32>
      %84 = vector.shape_cast %83 : vector<1x10x1024xf32> to vector<10x1024xf32>
      %85 = vector.shape_cast %82 : vector<10x1024xf32> to vector<1x10x1024xf32>
      tpu.vector_store %arg6[%c0_20, %c0_21, %c0_22], %85 {strides = array<i32>} : memref<2x10x1024xf32, #tpu.memory_space<vmem>>, vector<1x10x1024xf32>,
      %86 = vector.extract_strided_slice %70 {offsets = [40, 0], sizes = [40, 1024], strides = [1, 1]} : vector<80x1024xf32> to vector<40x1024xf32>
      %cst_23 = arith.constant dense<0.000000e+00> : vector<10x1024xf32>
      %87 = tpu.matmul %71, %86, %cst_23 {dimension_numbers = #tpu.dot_dimension_numbers<[1], [0], [0], [1], [0, 0, 1, 1], [], []>} : vector<10x40xf32>, vector<40x1024xf32>, vector<10x1024xf32> -> vector<10x1024xf32>
      %88 = arith.mulf %87, %87 : vector<10x1024xf32>
      %89 = vector.shape_cast %88 : vector<10x1024xf32> to vector<1x10x1024xf32>
      %cst_24 = arith.constant dense<0.000000e+00> : vector<1xf32>
      %90 = vector.multi_reduction <add>, %89, %cst_24 [1, 2] : vector<1x10x1024xf32> to vector<1xf32>
      %91 = vector.shape_cast %90 : vector<1xf32> to vector<1x1x1xf32>
      %92 = vector.extract %91[0, 0, 0] : f32 from vector<1x1x1xf32>
      %cst_25 = arith.constant 1.000000e+00 : f32
      %93 = arith.addf %cst_25, %92 : f32
      %94 = math.rsqrt %93 : f32
      %95 = vector.broadcast %94 : f32 to vector<10x1024xf32>
      %96 = arith.mulf %87, %95 : vector<10x1024xf32>
      %c1 = arith.constant 1 : index
      %c0_26 = arith.constant 0 : index
      %c0_27 = arith.constant 0 : index
      %97 = vector.load %arg6[%c1, %c0_26, %c0_27] : memref<2x10x1024xf32, #tpu.memory_space<vmem>>, vector<1x10x1024xf32>
      %98 = vector.shape_cast %97 : vector<1x10x1024xf32> to vector<10x1024xf32>
      %99 = vector.shape_cast %96 : vector<10x1024xf32> to vector<1x10x1024xf32>
      tpu.vector_store %arg6[%c1, %c0_26, %c0_27], %99 {strides = array<i32>} : memref<2x10x1024xf32, #tpu.memory_space<vmem>>, vector<1x10x1024xf32>,
    } else {
    }
    return
  }
  func.func @transform_0(%arg0: i32, %arg1: i32) -> (i32, i32) {
    %c0_i32 = arith.constant 0 : i32
    %c0_i32_0 = arith.constant 0 : i32
    return %arg0, %c0_i32 : i32, i32
  }
  func.func @transform_1(%arg0: i32, %arg1: i32) -> (i32, i32) {
    %c0_i32 = arith.constant 0 : i32
    %c0_i32_0 = arith.constant 0 : i32
    return %arg1, %c0_i32 : i32, i32
  }
  func.func @transform_2(%arg0: i32, %arg1: i32) -> (i32, i32) {
    %c0_i32 = arith.constant 0 : i32
    %c0_i32_0 = arith.constant 0 : i32
    %c0_i32_1 = arith.constant 0 : i32
    return %c0_i32, %c0_i32_0 : i32, i32
  }
  func.func @transform_3(%arg0: i32, %arg1: i32) -> (i32, i32) {
    %c0_i32 = arith.constant 0 : i32
    %c0_i32_0 = arith.constant 0 : i32
    %c0_i32_1 = arith.constant 0 : i32
    return %c0_i32, %c0_i32_0 : i32, i32
  }
  func.func @transform_4(%arg0: i32, %arg1: i32) -> (i32, i32, i32) {
    %c0_i32 = arith.constant 0 : i32
    %c0_i32_0 = arith.constant 0 : i32
    %c0_i32_1 = arith.constant 0 : i32
    return %arg0, %c0_i32, %c0_i32_0 : i32, i32, i32
  }
}

</mosaic_0001>

<bundles_post_ra>
// kernel: tpu_custom_call.1
= control target key start
LH: loop header
LB: loop body
LE: loop exit
PB: predicated region body
PF: predicated region fallthrough
CT: control target
= control target key end

     0   :  { %9 = vsyncpa [#allocation4], 0  ;;  %s4326_s0 = inlined_call_operand.vmem [shape: s32[80,8], index: 0, kind: input, shape index: {}]   ;;  %s4327_s1 = inlined_call_operand.hbm [shape: f32[128,1024], index: 1, kind: input, shape index: {}]   ;;  %s4328_s2 = inlined_call_operand.vmem [shape: f32[1,1024], index: 2, kind: input, shape index: {}]   ;;  %s4329_s3 = inlined_call_operand.vmem [shape: f32[10,40], index: 3, kind: input, shape index: {}]   ;;  %s4330_s4 = inlined_call_operand.vmem [shape: f32[2,10,1024], index: 4, kind: output, shape index: {}]  }
   0x1   :  { %11 = vsyncpa [#allocation4 + $0x1], 0  ;;  %s3035_s15 = smov 0   ;;  %s3037_s16 = smov 0  }
   0x2   :  { %s3039_s17 = smov 0   ;;  %s3041_s18 = smov 0  }
   0x3   :  { %s3043_s19 = smov 0   ;;  %s3045_s20 = smov 0  }
   0x4 LB: > { %s2548_s21 = sadd.s32 4294967295, %s2996_s20   ;;  %s26_s22 = sadd.s32 1, %s2992_s19  ;;  %s2996_s20 = sphi %s3045_s20, %s17_s20   ;;  %s2992_s19 = sphi %s3043_s19, %s4337_s19   ;;  %s2988_s18 = sphi %s3041_s18, %s4336_s18   ;;  %s2984_s17 = sphi %s3039_s17, %s4335_s17   ;;  %s2980_s16 = sphi %s3037_s16, %s4334_s16   ;;  %s2976_s15 = sphi %s3035_s15, %s4333_s15  }
   0x5   : > { %p27_p0 = scmp.ge.s32.totalorder %s26_s22, 2  ;;  %s62_s23 = sadd.s32 1, %s2984_s17 }
   0x6   : > { %p69_p1 = scmp.ne.s32.totalorder %s2984_s17, %s2980_s16  ;;  %p70_p2 = scmp.eq.s32.totalorder %s2996_s20, 0 }
   0x7   : > { %s4339_s22 = smov (%p27_p0, %s26_s22), 0  ;;  %p75_p4 = scmp.ne.s32.totalorder %s2980_s16, %s2976_s15 }
   0x8   : > { %p3071_p3 = por %p70_p2, %p69_p1  ;;  %s59_s25 = ssub.s32 %s2992_s19, %s4339_s22 }
   0x9   : > { %p76_p5 = scmp.eq.s32.totalorder %s2548_s21, 0  ;;  %p60_p6 = scmp.eq.s32.totalorder %s59_s25, 0 }
   0xa   : > { %p2789_p8 = scmp.lt.s32.totalorder %s2996_s20, 2  ;;  %s182_s28 = sand.u32 1, %s2984_s17  }
   0xb   : > { %p3078_p7 = por %p76_p5, %p75_p4  ;;  %s2774_s29 = sshll.u32 %s2992_s19, 9 }
   0xc   : > { %s3084_s27 = scalar_select %p60_p6, %s2984_s17, %s62_s23  }
   0xd   : > { %s2552_s30 = sshll.u32 %s182_s28, 9  ;;  %s192_s7 = scalar_lea.hbm %s4327_s1, %s2774_s29 }
   0xe   : > { %s193_s8 = sshll.u32 %s192_s7, 4  ;;  %s186_s9 = scalar_lea.vmem [#allocation3], %s2552_s30  ;;  %s194_s8 = int_to_ptr.hbm [resolvable:$true] %s193_s8 }
   0xf   : > { %s195_s10 = sshll.u32 %s186_s9, 4  ;;  %p2786_p9 = pnand %p2789_p8, %p3071_p3  ;;  %s196_s10 = int_to_ptr.vmem [resolvable:$true] %s195_s10 }
  0x10   : > { %p2556_p10 = scmp.ge.s32.totalorder %s2996_s20, 1  ;;  %p203_p11 = scmp.lt.s32.totalorder %s2996_s20, 3 }
  0x11   : > { %s183_s11 = scalar_lea.sflag [#allocation4], %s182_s28  ;;  %s2998_s12 = smov 1024  }
  0x12   : > { %s2999_s13 = smov 64   ;;  %p204_p12 = pnand %p2556_p10, %p203_p11 }
  0x13   : > { %2788 = dma.hbm_to_vmem [thread:$0]  (!%p2786_p9), %s194_s8, 8192, %s196_s10, %s183_s11, %s2998_s12, %s2998_s12, %s2999_s13  }
  0x14   : > { %207 = sbr.rel (%p204_p12) target bundleno = 1246 (0x4de), region = 36  ;;  %s209_s14 = sand.u32 (!%p204_p12), 1, %s2980_s16  }
  0x15   : > { %s2557_s15 = sshll.u32 (!%p204_p12), %s209_s14, 9  ;;  %s210_s21 = scalar_lea.sflag (!%p204_p12), [#allocation4], %s209_s14 }
  0x16   : > { %s3096_s23 = scalar_lea.vmem (!%p204_p12), [#allocation3], %s2557_s15 }
  0x19   : > { %2971 = dma.done.wait (%p3078_p7), %s210_s21, 8192  }
  0x1a   : > { %2973 = vsyncadd (%p3078_p7), %s210_s21, 4294959104  ;;  %p2558_p13 = scmp.ne.s32.totalorder %s2988_s18, 0 }
  0x1c   : > { %262 = sbr.rel (%p2558_p13) target bundleno = 114 (0x72), region = 44 }
  0x21   : > { %v3000_v0 = vmov 0.0  }
  0x22   : > { %263 = vst [vmem:[#allocation2 + $0xc8] sm:$0xff] %v3000_v0 }
  0x23   : > { %264 = vst [vmem:[#allocation2 + $0x8] sm:$0xff] %v3000_v0 }
  0x24   : > { %265 = vst [vmem:[#allocation2 + $0x40] sm:$0xff] %v3000_v0 }
  0x25   : > { %266 = vst [vmem:[#allocation2 + $0x28] sm:$0xff] %v3000_v0 }
  0x26   : > { %267 = vst [vmem:[#allocation2 + $0xe8] sm:$0xff] %v3000_v0 }
  0x27   : > { %268 = vst [vmem:[#allocation2 + $0xf0] sm:$0xff] %v3000_v0 }
  0x28   : > { %269 = vst [vmem:[#allocation2 + $0x70] sm:$0xff] %v3000_v0 }
  0x29   : > { %270 = vst [vmem:[#allocation2 + $0x120] sm:$0xff] %v3000_v0 }
  0x2a   : > { %271 = vst [vmem:[#allocation2 + $0xd8] sm:$0xff] %v3000_v0 }
  0x2b   : > { %272 = vst [vmem:[#allocation2 + $0x148] sm:$0xff] %v3000_v0 }
  0x2c   : > { %273 = vst [vmem:[#allocation2 + $0x158] sm:$0xff] %v3000_v0 }
  0x2d   : > { %274 = vst [vmem:[#allocation2 + $0x108] sm:$0xff] %v3000_v0 }
  0x2e   : > { %275 = vst [vmem:[#allocation2 + $0x220] sm:$0xff] %v3000_v0 }
  0x2f   : > { %276 = vst [vmem:[#allocation2 + $0xc0] sm:$0xff] %v3000_v0 }
  0x30   : > { %277 = vst [vmem:[#allocation2 + $0x140] sm:$0xff] %v3000_v0 }
  0x31   : > { %278 = vst [vmem:[#allocation2 + $0x200] sm:$0xff] %v3000_v0 }
  0x32   : > { %279 = vst [vmem:[#allocation2 + $0x80] sm:$0xff] %v3000_v0 }
  0x33   : > { %280 = vst [vmem:[#allocation2 + $0x30] sm:$0xff] %v3000_v0 }
  0x34   : > { %281 = vst [vmem:[#allocation2 + $0x10] sm:$0xff] %v3000_v0 }
  0x35   : > { %282 = vst [vmem:[#allocation2 + $0x160] sm:$0xff] %v3000_v0 }
  0x36   : > { %283 = vst [vmem:[#allocation2 + $0x1d8] sm:$0xff] %v3000_v0 }
  0x37   : > { %284 = vst [vmem:[#allocation2 + $0x1a0] sm:$0xff] %v3000_v0 }
  0x38   : > { %285 = vst [vmem:[#allocation2 + $0x248] sm:$0xff] %v3000_v0 }
  0x39   : > { %286 = vst [vmem:[#allocation2 + $0x218] sm:$0xff] %v3000_v0 }
  0x3a   : > { %287 = vst [vmem:[#allocation2 + $0x190] sm:$0xff] %v3000_v0 }
  0x3b   : > { %288 = vst [vmem:[#allocation2 + $0x48] sm:$0xff] %v3000_v0 }
  0x3c   : > { %289 = vst [vmem:[#allocation2 + $0x68] sm:$0xff] %v3000_v0 }
  0x3d   : > { %290 = vst [vmem:[#allocation2 + $0x238] sm:$0xff] %v3000_v0 }
  0x3e   : > { %291 = vst [vmem:[#allocation2 + $0x188] sm:$0xff] %v3000_v0 }
  0x3f   : > { %292 = vst [vmem:[#allocation2 + $0x250] sm:$0xff] %v3000_v0 }
  0x40   : > { %293 = vst [vmem:[#allocation2 + $0xb8] sm:$0xff] %v3000_v0 }
  0x41   : > { %294 = vst [vmem:[#allocation2 + $0x268] sm:$0xff] %v3000_v0 }
  0x42   : > { %295 = vst [vmem:[#allocation2 + $0xf8] sm:$0xff] %v3000_v0 }
  0x43   : > { %296 = vst [vmem:[#allocation2 + $0x98] sm:$0xff] %v3000_v0 }
  0x44   : > { %297 = vst [vmem:[#allocation2 + $0xe0] sm:$0xff] %v3000_v0 }
  0x45   : > { %298 = vst [vmem:[#allocation2 + $0x198] sm:$0xff] %v3000_v0 }
  0x46   : > { %299 = vst [vmem:[#allocation2 + $0x1d0] sm:$0xff] %v3000_v0 }
  0x47   : > { %300 = vst [vmem:[#allocation2 + $0x1e0] sm:$0xff] %v3000_v0 }
  0x48   : > { %301 = vst [vmem:[#allocation2 + $0x1a8] sm:$0xff] %v3000_v0 }
  0x49   : > { %302 = vst [vmem:[#allocation2 + $0x228] sm:$0xff] %v3000_v0 }
  0x4a   : > { %303 = vst [vmem:[#allocation2] sm:$0xff] %v3000_v0 }
  0x4b   : > { %304 = vst [vmem:[#allocation2 + $0x1b0] sm:$0xff] %v3000_v0 }
  0x4c   : > { %305 = vst [vmem:[#allocation2 + $0x90] sm:$0xff] %v3000_v0 }
  0x4d   : > { %306 = vst [vmem:[#allocation2 + $0x270] sm:$0xff] %v3000_v0 }
  0x4e   : > { %307 = vst [vmem:[#allocation2 + $0x1e8] sm:$0xff] %v3000_v0 }
  0x4f   : > { %308 = vst [vmem:[#allocation2 + $0x38] sm:$0xff] %v3000_v0 }
  0x50   : > { %309 = vst [vmem:[#allocation2 + $0x1c8] sm:$0xff] %v3000_v0 }
  0x51   : > { %310 = vst [vmem:[#allocation2 + $0x18] sm:$0xff] %v3000_v0 }
  0x52   : > { %311 = vst [vmem:[#allocation2 + $0x78] sm:$0xff] %v3000_v0 }
  0x53   : > { %312 = vst [vmem:[#allocation2 + $0x1f0] sm:$0xff] %v3000_v0 }
  0x54   : > { %313 = vst [vmem:[#allocation2 + $0xa0] sm:$0xff] %v3000_v0 }
  0x55   : > { %314 = vst [vmem:[#allocation2 + $0x1f8] sm:$0xff] %v3000_v0 }
  0x56   : > { %315 = vst [vmem:[#allocation2 + $0x58] sm:$0xff] %v3000_v0 }
  0x57   : > { %316 = vst [vmem:[#allocation2 + $0x258] sm:$0xff] %v3000_v0 }
  0x58   : > { %317 = vst [vmem:[#allocation2 + $0x260] sm:$0xff] %v3000_v0 }
  0x59   : > { %318 = vst [vmem:[#allocation2 + $0x100] sm:$0xff] %v3000_v0 }
  0x5a   : > { %319 = vst [vmem:[#allocation2 + $0x1b8] sm:$0xff] %v3000_v0 }
  0x5b   : > { %320 = vst [vmem:[#allocation2 + $0x168] sm:$0xff] %v3000_v0 }
  0x5c   : > { %321 = vst [vmem:[#allocation2 + $0xd0] sm:$0xff] %v3000_v0 }
  0x5d   : > { %322 = vst [vmem:[#allocation2 + $0x278] sm:$0xff] %v3000_v0 }
  0x5e   : > { %323 = vst [vmem:[#allocation2 + $0x210] sm:$0xff] %v3000_v0 }
  0x5f   : > { %324 = vst [vmem:[#allocation2 + $0x180] sm:$0xff] %v3000_v0 }
  0x60   : > { %325 = vst [vmem:[#allocation2 + $0x130] sm:$0xff] %v3000_v0 }
  0x61   : > { %326 = vst [vmem:[#allocation2 + $0x110] sm:$0xff] %v3000_v0 }
  0x62   : > { %327 = vst [vmem:[#allocation2 + $0xa8] sm:$0xff] %v3000_v0 }
  0x63   : > { %328 = vst [vmem:[#allocation2 + $0x60] sm:$0xff] %v3000_v0 }
  0x64   : > { %329 = vst [vmem:[#allocation2 + $0x138] sm:$0xff] %v3000_v0 }
  0x65   : > { %330 = vst [vmem:[#allocation2 + $0x208] sm:$0xff] %v3000_v0 }
  0x66   : > { %331 = vst [vmem:[#allocation2 + $0x240] sm:$0xff] %v3000_v0 }
  0x67   : > { %332 = vst [vmem:[#allocation2 + $0x88] sm:$0xff] %v3000_v0 }
  0x68   : > { %333 = vst [vmem:[#allocation2 + $0x118] sm:$0xff] %v3000_v0 }
  0x69   : > { %334 = vst [vmem:[#allocation2 + $0x128] sm:$0xff] %v3000_v0 }
  0x6a   : > { %335 = vst [vmem:[#allocation2 + $0x1c0] sm:$0xff] %v3000_v0 }
  0x6b   : > { %336 = vst [vmem:[#allocation2 + $0x230] sm:$0xff] %v3000_v0 }
  0x6c   : > { %337 = vst [vmem:[#allocation2 + $0x170] sm:$0xff] %v3000_v0 }
  0x6d   : > { %338 = vst [vmem:[#allocation2 + $0x150] sm:$0xff] %v3000_v0 }
  0x6e   : > { %339 = vst [vmem:[#allocation2 + $0x20] sm:$0xff] %v3000_v0 }
  0x6f   : > { %340 = vst [vmem:[#allocation2 + $0x178] sm:$0xff] %v3000_v0 }
  0x70   : > { %341 = vst [vmem:[#allocation2 + $0x50] sm:$0xff] %v3000_v0 }
  0x71   : > { %342 = vst [vmem:[#allocation2 + $0xb0] sm:$0xff] %v3000_v0 }
  0x72 PF: > { %v3186_v1 = vld [vmem:[%s4326_s0 + $0x20] sm:$0xff]  ;;  %v3191_v2 = vld [vmem:[%s4326_s0 + $0x10] sm:$0xff]  ;;  %v3001_v4 = vmov 0   ;;  %v3204_v5 = vld [vmem:[%s4326_s0 + $0x28] sm:$0xff]  ;;  %v3002_v12 = vmov 1   ;;  %v3003_v13 = vmov 2   ;;  %v354_v22 = vlaneseq }
  0x73   : > { %v3196_v3 = vld [vmem:[%s4326_s0] sm:$0xff]  ;;  %2852 = vset.pattern.permute.xlu2 %v3001_v4  ;;  %2851 = vset.pattern.permute.xlu1 %v3001_v4  ;;  %v3209_v6 = vld [vmem:[%s4326_s0 + $0x18] sm:$0xff]  ;;  %v3214_v7 = vld [vmem:[%s4326_s0 + $0x8] sm:$0xff]  ;;  %v3004_v14 = vmov 5   ;;  %v3005_v15 = vmov 3   ;;  %v3006_v16 = vmov 4  }
  0x74   : > { %2850 = vset.pattern.permute.xlu0 %v3001_v4  ;;  %371 = vperm.xlu2 %2852, %v3186_v1   ;;  %v3222_v8 = vld [vmem:[%s4326_s0 + $0x40] sm:$0xff]  ;;  %v3227_v9 = vld [vmem:[%s4326_s0 + $0x38] sm:$0xff]  ;;  %v3232_v10 = vld [vmem:[%s4326_s0 + $0x30] sm:$0xff]  ;;  %v3007_v17 = vmov 6   ;;  %v3008_v18 = vmov 7   ;;  %s2559_s26 = sshll.u32 %s2988_s18, 6 }
  0x75   : > { %365 = vperm.xlu1 %2851, %v3191_v2   ;;  %359 = vperm.xlu0 %2850, %v3196_v3   ;;  %v3240_v11 = vld [vmem:[%s4326_s0 + $0x48] sm:$0xff]  ;;  %v355_v23 = vand.u32 127, %v354_v22  ;;  %v356_v24 = vstv %s2559_s26  ;;  %v3009_v29 = vmov 0.0   ;;  %v1054_v60 = vld [vmem:[%s3096_s23 + $0x1c0] sm:$0xff]  ;;  %v1056_v62 = vld [vmem:[%s3096_s23 + $0x1d0] sm:$0xff]  ;;  %p2720_p0 = scmp.ne.s32.totalorder %s2988_s18, 1 }
  0x76   : > { %v1055_v61 = vld [vmem:[%s3096_s23 + $0x1c8] sm:$0xff]  ;;  %1101 = vmatpush.msra.mxu0 %v1054_v60  ;;  %v1057_v63 = vld [vmem:[%s3096_s23 + $0x1d8] sm:$0xff]  ;;  %1195 = vmatpush.msra.mxu2 %v1056_v62  ;;  %v1046_v0 = vld [vmem:[%s3096_s23 + $0x180] sm:$0xff] }
  0x77   : > { %v3302_v28 = vadd.s32 %v356_v24, %v355_v23  ;;  %1148 = vmatpush.msra.mxu1 %v1055_v61  ;;  %1242 = vmatpush.msra.mxu3 %v1057_v63  ;;  %v1009_v60 = vld [vmem:[%s3096_s23 + $0x58] sm:$0xff]  ;;  %v998_v61 = vld [vmem:[%s3096_s23] sm:$0xff]  ;;  %v999_v62 = vld [vmem:[%s3096_s23 + $0x8] sm:$0xff] }
  0x78   : > { %1102 = vmatpush.msra.mxu0 %v1046_v0  ;;  %v1000_v63 = vld [vmem:[%s3096_s23 + $0x10] sm:$0xff]  ;;  %v1001_v0 = vld [vmem:[%s3096_s23 + $0x18] sm:$0xff] }
  0x7c   : > { %374 = vperm.xlu2 %2852, %v3204_v5  }
  0x7d   : > { %368 = vperm.xlu1 %2851, %v3209_v6   ;;  %362 = vperm.xlu0 %2850, %v3214_v7  }
  0x84   : > { %383 = vperm.xlu2 %2852, %v3222_v8  }
  0x85   : > { %380 = vperm.xlu1 %2851, %v3227_v9   ;;  %377 = vperm.xlu0 %2850, %v3232_v10  }
  0x8c   : > { %2854 = vset.pattern.permute.xlu2 %v3002_v12 }
  0x8d   : > { %2853 = vset.pattern.permute.xlu1 %v3002_v12  ;;  %386 = vperm.xlu0 %2850, %v3240_v11  }
  0x8e   : > { %432 = vperm.xlu2 %2854, %v3214_v7   ;;  %429 = vperm.xlu1 %2853, %v3196_v3  }
  0x95   : > { %2855 = vset.pattern.permute.xlu0 %v3002_v12  ;;  %v1038_v12 = vld [vmem:[%s3096_s23 + $0x140] sm:$0xff] }
  0x96   : > { %441 = vperm.xlu2 %2854, %v3186_v1   ;;  %438 = vperm.xlu1 %2853, %v3209_v6  }
  0x97   : > { %435 = vperm.xlu0 %2855, %v3191_v2   ;;  %1103 = vmatpush.msra.mxu0 %v1038_v12 }
  0x9e   : > { %447 = vperm.xlu2 %2854, %v3232_v10   ;;  %444 = vperm.xlu1 %2853, %v3204_v5  }
  0x9f   : > { %450 = vperm.xlu0 %2855, %v3227_v9  }
  0xa6   : > { %456 = vperm.xlu2 %2854, %v3240_v11   ;;  %453 = vperm.xlu1 %2853, %v3222_v8  }
  0xa7   : > { %2856 = vset.pattern.permute.xlu0 %v3003_v13 }
  0xa8   : > { %499 = vperm.xlu0 %2856, %v3196_v3  }
  0xae   : > { %2858 = vset.pattern.permute.xlu2 %v3003_v13  ;;  %2857 = vset.pattern.permute.xlu1 %v3003_v13 }
  0xaf   : > { %505 = vperm.xlu2 %2858, %v3191_v2   ;;  %502 = vperm.xlu1 %2857, %v3214_v7  }
  0xb0   : > { %2872 = vset.pattern.permute.xlu0 %v3004_v14 }
  0xb1   : > { %718 = vperm.xlu0 %2872, %v3209_v6  }
  0xb7   : > { %2859 = vset.pattern.permute.xlu2 %v3005_v15  ;;  %508 = vperm.xlu1 %2857, %v3209_v6  }
  0xb8   : > { %569 = vperm.xlu2 %2859, %v3196_v3  }
  0xb9   : > { %2873 = vset.pattern.permute.xlu0 %v3006_v16 }
  0xba   : > { %639 = vperm.xlu0 %2873, %v3196_v3  }
  0xbf   : > { %2860 = vset.pattern.permute.xlu1 %v3004_v14 }
  0xc0   : > { %2861 = vset.pattern.permute.xlu2 %v3007_v17  ;;  %709 = vperm.xlu1 %2860, %v3196_v3  }
  0xc1   : > { %779 = vperm.xlu2 %2861, %v3196_v3  }
  0xc2   : > { %642 = vperm.xlu0 %2873, %v3214_v7  }
  0xc8   : > { %2862 = vset.pattern.permute.xlu1 %v3005_v15 }
  0xc9   : > { %2863 = vset.pattern.permute.xlu2 %v3008_v18  ;;  %572 = vperm.xlu1 %2862, %v3214_v7  }
  0xca   : > { %651 = vperm.xlu0 %2873, %v3186_v1   ;;  %849 = vperm.xlu2 %2863, %v3196_v3   ;;  %v1048_v3 = vld [vmem:[%s3096_s23 + $0x190] sm:$0xff] }
  0xcb   : > { %1196 = vmatpush.msra.mxu2 %v1048_v3 }
  0xce   : > { %v372_v19 = vpop.permute.xlu2 %371 }
  0xcf   : > { %vm392_vm1 = vcmp.eq.s32.totalorder %v372_v19, %v3302_v28  ;;  %v1039_v19 = vld [vmem:[%s3096_s23 + $0x148] sm:$0xff] }
  0xd0   : > { %v2564_v35 = vsel %vm392_vm1, 1.0, %v3009_v29 }
  0xd1   : > { %2864 = vset.pattern.permute.xlu1 %v3004_v14 }
  0xd2   : > { %2882 = vset.pattern.permute.xlu0 %v3008_v18  ;;  %2865 = vset.pattern.permute.xlu2 %v3007_v17 }
  0xd3   : > { %712 = vperm.xlu1 %2864, %v3214_v7   ;;  %861 = vperm.xlu0 %2882, %v3186_v1  }
  0xd4   : > { %782 = vperm.xlu2 %2865, %v3214_v7  }
  0xd6   : > { %v3282_v20 = vpop.permute.xlu2 %374 }
  0xd7   : > { %vm393_vm12 = vcmp.eq.s32.totalorder %v3282_v20, %v3302_v28 }
  0xd8   : > { %v2565_v22 = vsel %vm393_vm12, 1.0, %v3009_v29 }
  0xdb   : > { %2866 = vset.pattern.permute.xlu1 %v3008_v18  ;;  %2883 = vset.pattern.permute.xlu0 %v3005_v15 }
  0xdc   : > { %2867 = vset.pattern.permute.xlu2 %v3006_v16  ;;  %852 = vperm.xlu1 %2866, %v3214_v7  }
  0xdd   : > { %575 = vperm.xlu0 %2883, %v3191_v2   ;;  %645 = vperm.xlu2 %2867, %v3191_v2  }
  0xde   : > { %v3290_v21 = vpop.permute.xlu2 %383 }
  0xe4   : > { %2868 = vset.pattern.permute.xlu1 %v3004_v14 }
  0xe5   : > { %578 = vperm.xlu0 %2883, %v3209_v6   ;;  %2869 = vset.pattern.permute.xlu2 %v3007_v17 }
  0xe6   : > { %715 = vperm.xlu1 %2868, %v3191_v2   ;;  %785 = vperm.xlu2 %2869, %v3191_v2  }
  0xe7   : > { %v3298_v25 = vpop.permute.xlu1 %365  ;;  %v3300_v26 = vpop.permute.xlu0 %359 }
  0xe8   : > { %v433_v27 = vpop.permute.xlu2 %432  ;;  %vm390_vm9 = vcmp.eq.s32.totalorder %v3298_v25, %v3302_v28  ;;  %v1040_v25 = vld [vmem:[%s3096_s23 + $0x150] sm:$0xff] }
  0xe9   : > { %vm459_vm0 = vcmp.eq.s32.totalorder %v433_v27, %v3302_v28  ;;  %v2562_v56 = vsel %vm390_vm9, 1.0, %v3009_v29  ;;  %v1041_v27 = vld [vmem:[%s3096_s23 + $0x158] sm:$0xff]  ;;  %1197 = vmatpush.msra.mxu2 %v1040_v25 }
  0xea   : > { %v2571_v30 = vsel %vm459_vm0, 1.0, %v3009_v29  ;;  %vm396_vm0 = vcmp.eq.s32.totalorder %v3290_v21, %v3302_v28 }
  0xed   : > { %587 = vperm.xlu0 %2883, %v3232_v10  }
  0xee   : > { %2870 = vset.pattern.permute.xlu1 %v3008_v18  ;;  %2871 = vset.pattern.permute.xlu2 %v3006_v16 }
  0xef   : > { %855 = vperm.xlu1 %2870, %v3191_v2   ;;  %648 = vperm.xlu2 %2871, %v3209_v6   ;;  %v369_v31 = vpop.permute.xlu1 %368  ;;  %v363_v32 = vpop.permute.xlu0 %362  ;;  %v1047_v2 = vld [vmem:[%s3096_s23 + $0x188] sm:$0xff] }
  0xf0   : > { %v442_v33 = vpop.permute.xlu2 %441  ;;  %vm389_vm2 = vcmp.eq.s32.totalorder %v363_v32, %v3302_v28  ;;  %vm391_vm8 = vcmp.eq.s32.totalorder %v369_v31, %v3302_v28  ;;  %1149 = vmatpush.msra.mxu1 %v1047_v2  ;;  %v1030_v32 = vld [vmem:[%s3096_s23 + $0x100] sm:$0xff] }
  0xf1   : > { %vm462_vm3 = vcmp.eq.s32.totalorder %v442_v33, %v3302_v28  ;;  %v2561_v34 = vsel %vm389_vm2, 1.0, %v3009_v29  ;;  %v2563_v53 = vsel %vm391_vm8, 1.0, %v3009_v29  ;;  %v1031_v33 = vld [vmem:[%s3096_s23 + $0x108] sm:$0xff]  ;;  %1104 = vmatpush.msra.mxu0 %v1030_v32  ;;  %vm388_vm2 = vcmp.eq.s32.totalorder %v3300_v26, %v3302_v28 }
  0xf2   : > { %v2574_v36 = vsel %vm462_vm3, 1.0, %v3009_v29  ;;  %v3317_v37 = vadd.f32 %v2571_v30, %v2561_v34  ;;  %1150 = vmatpush.msra.mxu1 %v1039_v19 }
  0xf3   : > { %v3319_v38 = vadd.f32 %v2574_v36, %v2564_v35  ;;  %v1032_v35 = vld [vmem:[%s3096_s23 + $0x110] sm:$0xff]  ;;  %v1033_v36 = vld [vmem:[%s3096_s23 + $0x118] sm:$0xff] }
  0xf4   : > { %1151 = vmatpush.msra.mxu1 %v1031_v33  ;;  %1198 = vmatpush.msra.mxu2 %v1032_v35 }
  0xf5   : > { %2892 = vset.pattern.permute.xlu0 %v3007_v17 }
  0xf6   : > { %797 = vperm.xlu0 %2892, %v3232_v10  }
  0xf7   : > { %2874 = vset.pattern.permute.xlu1 %v3003_v13  ;;  %2875 = vset.pattern.permute.xlu2 %v3007_v17  ;;  %v3325_v39 = vpop.permute.xlu1 %380  ;;  %v378_v40 = vpop.permute.xlu0 %377 }
  0xf8   : > { %511 = vperm.xlu1 %2874, %v3186_v1   ;;  %788 = vperm.xlu2 %2875, %v3209_v6   ;;  %vm394_vm4 = vcmp.eq.s32.totalorder %v378_v40, %v3302_v28  ;;  %v448_v41 = vpop.permute.xlu2 %447  ;;  %vm395_vm13 = vcmp.eq.s32.totalorder %v3325_v39, %v3302_v28  ;;  %v1022_v39 = vld [vmem:[%s3096_s23 + $0xc0] sm:$0xff]  ;;  %v1023_v40 = vld [vmem:[%s3096_s23 + $0xc8] sm:$0xff] }
  0xf9   : > { %v2566_v42 = vsel %vm394_vm4, 1.0, %v3009_v29  ;;  %vm464_vm5 = vcmp.eq.s32.totalorder %v448_v41, %v3302_v28  ;;  %v2567_v20 = vsel %vm395_vm13, 1.0, %v3009_v29  ;;  %v1025_v41 = vld [vmem:[%s3096_s23 + $0xd8] sm:$0xff]  ;;  %1105 = vmatpush.msra.mxu0 %v1022_v39  ;;  %1152 = vmatpush.msra.mxu1 %v1023_v40 }
  0xfa   : > { %v2576_v43 = vsel %vm464_vm5, 1.0, %v3009_v29 }
  0xfb   : > { %v3333_v44 = vadd.f32 %v2576_v43, %v2566_v42  ;;  %v1014_v42 = vld [vmem:[%s3096_s23 + $0x80] sm:$0xff]  ;;  %v1015_v43 = vld [vmem:[%s3096_s23 + $0x88] sm:$0xff] }
  0xfc   : > { %1106 = vmatpush.msra.mxu0 %v1014_v42  ;;  %1153 = vmatpush.msra.mxu1 %v1015_v43 }
  0xfe   : > { %2897 = vset.pattern.permute.xlu0 %v3003_v13 }
  0xff   : > { %523 = vperm.xlu0 %2897, %v3222_v8   ;;  %v387_v45 = vpop.permute.xlu0 %386 }
 0x100   : > { %2876 = vset.pattern.permute.xlu1 %v3005_v15  ;;  %2877 = vset.pattern.permute.xlu2 %v3008_v18  ;;  %v3339_v46 = vpop.permute.xlu1 %429  ;;  %vm397_vm6 = vcmp.eq.s32.totalorder %v387_v45, %v3302_v28  ;;  %v457_v47 = vpop.permute.xlu2 %456 }
 0x101   : > { %581 = vperm.xlu1 %2876, %v3186_v1   ;;  %858 = vperm.xlu2 %2877, %v3209_v6   ;;  %v2569_v48 = vsel %vm397_vm6, 1.0, %v3009_v29  ;;  %vm467_vm7 = vcmp.eq.s32.totalorder %v457_v47, %v3302_v28  ;;  %v1049_v6 = vld [vmem:[%s3096_s23 + $0x198] sm:$0xff]  ;;  %v2568_v47 = vsel %vm396_vm0, 1.0, %v3009_v29  ;;  %vm458_vm3 = vcmp.eq.s32.totalorder %v3339_v46, %v3302_v28 }
 0x102   : > { %v2579_v49 = vsel %vm467_vm7, 1.0, %v3009_v29  ;;  %1243 = vmatpush.msra.mxu3 %v1049_v6  ;;  %v2560_v6 = vsel %vm388_vm2, 1.0, %v3009_v29 }
 0x103   : > { %v3347_v50 = vadd.f32 %v2579_v49, %v2569_v48  ;;  %v1016_v48 = vld [vmem:[%s3096_s23 + $0x90] sm:$0xff]  ;;  %v1017_v49 = vld [vmem:[%s3096_s23 + $0x98] sm:$0xff] }
 0x104   : > { %1244 = vmatpush.msra.mxu3 %v1041_v27 }
 0x106   : > { %1245 = vmatpush.msra.mxu3 %v1033_v36 }
 0x107   : > { %2902 = vset.pattern.permute.xlu0 %v3004_v14 }
 0x108   : > { %v439_v51 = vpop.permute.xlu1 %438  ;;  %733 = vperm.xlu0 %2902, %v3222_v8   ;;  %1246 = vmatpush.msra.mxu3 %v1025_v41 }
 0x109   : > { %2878 = vset.pattern.permute.xlu1 %v3004_v14  ;;  %2879 = vset.pattern.permute.xlu2 %v3003_v13  ;;  %vm461_vm10 = vcmp.eq.s32.totalorder %v439_v51, %v3302_v28  ;;  %v436_v52 = vpop.permute.xlu0 %435  ;;  %v3362_v55 = vpop.permute.xlu2 %505 }
 0x10a   : > { %721 = vperm.xlu1 %2878, %v3186_v1   ;;  %v2573_v54 = vsel %vm461_vm10, 1.0, %v3009_v29  ;;  %vm460_vm11 = vcmp.eq.s32.totalorder %v436_v52, %v3302_v28  ;;  %514 = vperm.xlu2 %2879, %v3204_v5   ;;  %vm1062_vm10 = vcmask 523264  }
 0x10b   : > { %v3365_v57 = vadd.f32 %v2573_v54, %v2563_v53  ;;  %v2572_v58 = vsel %vm460_vm11, 1.0, %v3009_v29  ;;  %v1006_v54 = vld [vmem:[%s3096_s23 + $0x40] sm:$0xff]  ;;  %1247 = vmatpush.msra.mxu3 %v1017_v49 }
 0x10c   : > { %v3368_v59 = vadd.f32 %v2572_v58, %v2562_v56  ;;  %v1007_v56 = vld [vmem:[%s3096_s23 + $0x48] sm:$0xff]  ;;  %v1008_v58 = vld [vmem:[%s3096_s23 + $0x50] sm:$0xff]  ;;  %1107 = vmatpush.msra.mxu0 %v1006_v54 }
 0x10d   : > { %1154 = vmatpush.msra.mxu1 %v1007_v56  ;;  %1248 = vmatpush.msra.mxu3 %v1009_v60 }
 0x10e   : > { %1108 = vmatpush.msra.mxu0 %v998_v61 }
 0x10f   : > { %1155 = vmatpush.msra.mxu1 %v999_v62  ;;  %1249 = vmatpush.msra.mxu3 %v1001_v0 }
 0x110   : > { %v445_v4 = vpop.permute.xlu1 %444  ;;  %2907 = vset.pattern.permute.xlu0 %v3006_v16 }
 0x111   : > { %vm463_vm14 = vcmp.eq.s32.totalorder %v445_v4, %v3302_v28  ;;  %v451_v7 = vpop.permute.xlu0 %450  ;;  %666 = vperm.xlu0 %2907, %v3240_v11  }
 0x112   : > { %2880 = vset.pattern.permute.xlu1 %v3007_v17  ;;  %v2575_v23 = vsel %vm463_vm14, 1.0, %v3009_v29  ;;  %vm465_vm15 = vcmp.eq.s32.totalorder %v451_v7, %v3302_v28  ;;  %2881 = vset.pattern.permute.xlu2 %v3005_v15  ;;  %v3393_v24 = vpop.permute.xlu2 %569  ;;  %v2570_v7 = vsel %vm458_vm3, 1.0, %v3009_v29 }
 0x113   : > { %v3401_v30 = vadd.f32 %v2575_v23, %v2565_v22  ;;  %v2577_v31 = vsel %vm465_vm15, 1.0, %v3009_v29  ;;  %791 = vperm.xlu1 %2880, %v3186_v1   ;;  %584 = vperm.xlu2 %2881, %v3204_v5   ;;  %v1024_v1 = vld [vmem:[%s3096_s23 + $0xd0] sm:$0xff]  ;;  %v488_v22 = vadd.f32 %v2570_v7, %v2560_v6  ;;  %vm598_vm5 = vcmp.eq.s32.totalorder %v3393_v24, %v3302_v28 }
 0x114   : > { %v3408_v34 = vadd.f32 %v2577_v31, %v2567_v20  ;;  %1199 = vmatpush.msra.mxu2 %v1024_v1  ;;  %v2590_v23 = vsel %vm598_vm5, 1.0, %v3009_v29 }
 0x116   : > { %1200 = vmatpush.msra.mxu2 %v1016_v48 }
 0x118   : > { %v454_v45 = vpop.permute.xlu1 %453  ;;  %1201 = vmatpush.msra.mxu2 %v1008_v58 }
 0x119   : > { %vm466_vm1 = vcmp.eq.s32.totalorder %v454_v45, %v3302_v28  ;;  %2911 = vset.pattern.permute.xlu0 %v3008_v18 }
 0x11a   : > { %v2578_v21 = vsel %vm466_vm1, 1.0, %v3009_v29  ;;  %v500_v52 = vpop.permute.xlu0 %499  ;;  %1202 = vmatpush.msra.mxu2 %v1000_v63  ;;  %vm530_vm1 = vcmp.eq.s32.totalorder %v3362_v55, %v3302_v28 }
 0x11b   : > { %v3425_v51 = vadd.f32 %v2578_v21, %v2568_v47  ;;  %2884 = vset.pattern.permute.xlu1 %v3006_v16  ;;  %2885 = vset.pattern.permute.xlu2 %v3004_v14  ;;  %v780_v53 = vpop.permute.xlu2 %779  ;;  %vm528_vm4 = vcmp.eq.s32.totalorder %v500_v52, %v3302_v28 }
 0x11c   : > { %654 = vperm.xlu1 %2884, %v3204_v5   ;;  %724 = vperm.xlu2 %2885, %v3204_v5   ;;  %v2580_v19 = vsel %vm528_vm4, 1.0, %v3009_v29  ;;  %vm808_vm7 = vcmp.eq.s32.totalorder %v780_v53, %v3302_v28 }
 0x11d   : > { %v558_v46 = vadd.f32 %v2580_v19, %v488_v22  ;;  %v2620_v32 = vsel %vm808_vm7, 1.0, %v3009_v29 }
 0x11f   : > { %v628_v24 = vadd.f32 %v2590_v23, %v558_v46 }
 0x121   : > { %v503_v2 = vpop.permute.xlu1 %502 }
 0x122   : > { %vm529_vm11 = vcmp.eq.s32.totalorder %v503_v2, %v3302_v28 }
 0x123   : > { %v3440_v3 = vpop.permute.xlu0 %718  ;;  %v2581_v43 = vsel %vm529_vm11, 1.0, %v3009_v29 }
 0x124   : > { %2886 = vset.pattern.permute.xlu1 %v3003_v13  ;;  %2887 = vset.pattern.permute.xlu2 %v3007_v17  ;;  %v850_v4 = vpop.permute.xlu2 %849  ;;  %v559_v21 = vadd.f32 %v2581_v43, %v3317_v37 }
 0x125   : > { %517 = vperm.xlu1 %2886, %v3232_v10   ;;  %794 = vperm.xlu2 %2887, %v3204_v5   ;;  %vm878_vm8 = vcmp.eq.s32.totalorder %v850_v4, %v3302_v28  ;;  %v2582_v4 = vsel %vm530_vm1, 1.0, %v3009_v29 }
 0x126   : > { %v2630_v36 = vsel %vm878_vm8, 1.0, %v3009_v29  ;;  %v560_v6 = vadd.f32 %v2582_v4, %v3368_v59 }
 0x129   : > { %v3454_v12 = vpop.permute.xlu1 %508 }
 0x12a   : > { %vm531_vm3 = vcmp.eq.s32.totalorder %v3454_v12, %v3302_v28 }
 0x12b   : > { %v2583_v7 = vsel %vm531_vm3, 1.0, %v3009_v29 }
 0x12c   : > { %v640_v26 = vpop.permute.xlu0 %639  ;;  %v561_v23 = vadd.f32 %v2583_v7, %v3365_v57 }
 0x12d   : > { %2888 = vset.pattern.permute.xlu1 %v3008_v18  ;;  %vm668_vm6 = vcmp.eq.s32.totalorder %v640_v26, %v3302_v28  ;;  %2889 = vset.pattern.permute.xlu2 %v3006_v16 }
 0x12e   : > { %864 = vperm.xlu1 %2888, %v3204_v5   ;;  %657 = vperm.xlu2 %2889, %v3232_v10   ;;  %v783_v25 = vpop.permute.xlu2 %782  ;;  %v2600_v27 = vsel %vm668_vm6, 1.0, %v3009_v29 }
 0x12f   : > { %v698_v31 = vadd.f32 %v2600_v27, %v628_v24  ;;  %vm809_vm15 = vcmp.eq.s32.totalorder %v783_v25, %v3302_v28 }
 0x130   : > { %v2621_v58 = vsel %vm809_vm15, 1.0, %v3009_v29 }
 0x132   : > { %v710_v20 = vpop.permute.xlu1 %709 }
 0x133   : > { %vm738_vm9 = vcmp.eq.s32.totalorder %v710_v20, %v3302_v28 }
 0x134   : > { %v2610_v33 = vsel %vm738_vm9, 1.0, %v3009_v29  ;;  %v643_v35 = vpop.permute.xlu0 %642  ;;  %vm741_vm9 = vcmp.eq.s32.totalorder %v3440_v3, %v3302_v28 }
 0x135   : > { %v768_v5 = vadd.f32 %v2610_v33, %v698_v31  ;;  %vm669_vm13 = vcmp.eq.s32.totalorder %v643_v35, %v3302_v28 }
 0x136   : > { %2890 = vset.pattern.permute.xlu1 %v3004_v14  ;;  %2891 = vset.pattern.permute.xlu2 %v3003_v13  ;;  %v2601_v53 = vsel %vm669_vm13, 1.0, %v3009_v29 }
 0x137   : > { %v838_v39 = vadd.f32 %v2620_v32, %v768_v5  ;;  %727 = vperm.xlu1 %2890, %v3232_v10   ;;  %520 = vperm.xlu2 %2891, %v3227_v9   ;;  %v3477_v40 = vpop.permute.xlu2 %645  ;;  %v2613_v32 = vsel %vm741_vm9, 1.0, %v3009_v29 }
 0x138   : > { %vm670_vm4 = vcmp.eq.s32.totalorder %v3477_v40, %v3302_v28 }
 0x139   : > { %v3479_v1 = vadd.f32 %v2630_v36, %v838_v39  ;;  %v2602_v26 = vsel %vm670_vm4, 1.0, %v3009_v29 }
 0x13b   : > { %v573_v41 = vpop.permute.xlu1 %572  ;;  %2640 = vmatmul.msk.f32.vlgmr.msra.gmra.mxu0 %vm1062_vm10, %v3479_v1  ;;  %2650 = vmatmul.msk.f32.vlgmr.msra.gmra.mxu1 %vm1062_vm10, %v3479_v1 }
 0x13c   : > { %2660 = vmatmul.msk.f32.vlgmr.msra.gmra.mxu2 %vm1062_vm10, %v3479_v1  ;;  %2670 = vmatmul.msk.f32.vlgmr.msra.gmra.mxu3 %vm1062_vm10, %v3479_v1  ;;  %v3489_v42 = vpop.permute.xlu0 %651  ;;  %vm599_vm12 = vcmp.eq.s32.totalorder %v573_v41, %v3302_v28 }
 0x13d   : > { %v2591_v47 = vsel %vm599_vm12, 1.0, %v3009_v29 }
 0x13e   : > { %v629_v48 = vadd.f32 %v2591_v47, %v559_v21 }
 0x13f   : > { %2893 = vset.pattern.permute.xlu1 %v3005_v15  ;;  %2894 = vset.pattern.permute.xlu2 %v3008_v18 }
 0x140   : > { %590 = vperm.xlu1 %2893, %v3227_v9   ;;  %867 = vperm.xlu2 %2894, %v3232_v10   ;;  %v3498_v45 = vpop.permute.xlu2 %785  ;;  %v699_v10 = vadd.f32 %v2601_v53, %v629_v48 }
 0x141   : > { %vm810_vm8 = vcmp.eq.s32.totalorder %v3498_v45, %v3302_v28 }
 0x145   : > { %v713_v49 = vpop.permute.xlu1 %712  ;;  %v3503_v52 = vpop.permute.xlu0 %861 }
 0x146   : > { %vm739_vm14 = vcmp.eq.s32.totalorder %v713_v49, %v3302_v28 }
 0x147   : > { %v2611_v54 = vsel %vm739_vm14, 1.0, %v3009_v29 }
 0x148   : > { %2895 = vset.pattern.permute.xlu1 %v3006_v16  ;;  %2896 = vset.pattern.permute.xlu2 %v3004_v14  ;;  %v769_v56 = vadd.f32 %v2611_v54, %v699_v10 }
 0x149   : > { %660 = vperm.xlu1 %2895, %v3227_v9   ;;  %730 = vperm.xlu2 %2896, %v3227_v9   ;;  %v649_v37 = vpop.permute.xlu2 %648 }
 0x14a   : > { %v839_v61 = vadd.f32 %v2621_v58, %v769_v56  ;;  %vm671_vm7 = vcmp.eq.s32.totalorder %v649_v37, %v3302_v28 }
 0x14b   : > { %v2603_v57 = vsel %vm671_vm7, 1.0, %v3009_v29 }
 0x14e   : > { %v853_v60 = vpop.permute.xlu1 %852 }
 0x14f   : > { %vm879_vm0 = vcmp.eq.s32.totalorder %v853_v60, %v3302_v28  ;;  %v576_v62 = vpop.permute.xlu0 %575  ;;  %v1060_v60 = vld [vmem:[%s3096_s23 + $0x1f0] sm:$0xff] }
 0x150   : > { %v2631_v63 = vsel %vm879_vm0, 1.0, %v3009_v29  ;;  %vm600_vm2 = vcmp.eq.s32.totalorder %v576_v62, %v3302_v28  ;;  %vm672_vm0 = vcmp.eq.s32.totalorder %v3489_v42, %v3302_v28  ;;  %1383 = vmatpush.msrb.mxu2 %v1060_v60 }
 0x151   : > { %v3518_v0 = vadd.f32 %v2631_v63, %v839_v61  ;;  %2898 = vset.pattern.permute.xlu1 %v3007_v17  ;;  %2899 = vset.pattern.permute.xlu2 %v3005_v15  ;;  %v2592_v55 = vsel %vm600_vm2, 1.0, %v3009_v29  ;;  %v2604_v49 = vsel %vm672_vm0, 1.0, %v3009_v29  ;;  %vm882_vm2 = vcmp.eq.s32.totalorder %v3503_v52, %v3302_v28  ;;  %v1061_v61 = vld [vmem:[%s3096_s23 + $0x1f8] sm:$0xff] }
 0x152   : > { %800 = vperm.xlu1 %2898, %v3227_v9   ;;  %593 = vperm.xlu2 %2899, %v3222_v8   ;;  %v789_v2 = vpop.permute.xlu2 %788  ;;  %v630_v22 = vadd.f32 %v2592_v55, %v560_v6  ;;  %v1058_v55 = vld [vmem:[%s3096_s23 + $0x1e0] sm:$0xff]  ;;  %v1059_v6 = vld [vmem:[%s3096_s23 + $0x1e8] sm:$0xff] }
 0x153   : > { %2641 = vmatmul.msk.f32.gmra.mxu0 %vm1062_vm10, %v3518_v0  ;;  %2651 = vmatmul.msk.f32.gmra.mxu1 %vm1062_vm10, %v3518_v0  ;;  %vm811_vm11 = vcmp.eq.s32.totalorder %v789_v2, %v3302_v28 }
 0x154   : > { %2661 = vmatmul.msk.f32.gmra.mxu2 %vm1062_vm10, %v3518_v0  ;;  %2671 = vmatmul.msk.f32.gmra.mxu3 %vm1062_vm10, %v3518_v0  ;;  %v700_v24 = vadd.f32 %v2602_v26, %v630_v22  ;;  %v2623_v36 = vsel %vm811_vm11, 1.0, %v3009_v29  ;;  %v1053_v26 = vld [vmem:[%s3096_s23 + $0x1b8] sm:$0xff] }
 0x155   : > { %1430 = vmatpush.msrb.mxu3 %v1061_v61  ;;  %1289 = vmatpush.msrb.mxu0 %v1058_v55 }
 0x156   : > { %1336 = vmatpush.msrb.mxu1 %v1059_v6  ;;  %v1026_v6 = vld [vmem:[%s3096_s23 + $0xe0] sm:$0xff] }
 0x157   : > { %v579_v19 = vpop.permute.xlu0 %578  ;;  %1431 = vmatpush.msrb.mxu3 %v1053_v26 }
 0x158   : > { %vm601_vm5 = vcmp.eq.s32.totalorder %v579_v19, %v3302_v28  ;;  %v716_v12 = vpop.permute.xlu1 %715 }
 0x159   : > { %v2593_v46 = vsel %vm601_vm5, 1.0, %v3009_v29  ;;  %vm740_vm6 = vcmp.eq.s32.totalorder %v716_v12, %v3302_v28  ;;  %v1052_v12 = vld [vmem:[%s3096_s23 + $0x1b0] sm:$0xff] }
 0x15a   : > { %2900 = vset.pattern.permute.xlu1 %v3008_v18  ;;  %2901 = vset.pattern.permute.xlu2 %v3006_v16  ;;  %v2612_v59 = vsel %vm740_vm6, 1.0, %v3009_v29  ;;  %v631_v27 = vadd.f32 %v2593_v46, %v561_v23  ;;  %v2622_v16 = vsel %vm810_vm8, 1.0, %v3009_v29 }
 0x15b   : > { %870 = vperm.xlu1 %2900, %v3227_v9   ;;  %663 = vperm.xlu2 %2901, %v3222_v8   ;;  %v859_v25 = vpop.permute.xlu2 %858  ;;  %v770_v20 = vadd.f32 %v2612_v59, %v700_v24  ;;  %v1050_v24 = vld [vmem:[%s3096_s23 + $0x1a0] sm:$0xff] }
 0x15c   : > { %v701_v31 = vadd.f32 %v2603_v57, %v631_v27  ;;  %vm881_vm13 = vcmp.eq.s32.totalorder %v859_v25, %v3302_v28  ;;  %1384 = vmatpush.msrb.mxu2 %v1052_v12  ;;  %v1051_v57 = vld [vmem:[%s3096_s23 + $0x1a8] sm:$0xff]  ;;  %1290 = vmatpush.msrb.mxu0 %v1050_v24 }
 0x15d   : > { %v840_v33 = vadd.f32 %v2622_v16, %v770_v20  ;;  %v2633_v40 = vsel %vm881_vm13, 1.0, %v3009_v29  ;;  %1337 = vmatpush.msrb.mxu1 %v1051_v57 }
 0x15e   : > { %v771_v5 = vadd.f32 %v2613_v32, %v701_v31 }
 0x15f   : > { %v588_v23 = vpop.permute.xlu0 %587 }
 0x160   : > { %vm604_vm11 = vcmp.eq.s32.totalorder %v588_v23, %v3302_v28 }
 0x161   : > { %v856_v9 = vpop.permute.xlu1 %855 }
 0x162   : > { %vm880_vm12 = vcmp.eq.s32.totalorder %v856_v9, %v3302_v28 }
 0x163   : > { %v2632_v35 = vsel %vm880_vm12, 1.0, %v3009_v29  ;;  %2903 = vset.pattern.permute.xlu1 %v3003_v13  ;;  %2904 = vset.pattern.permute.xlu2 %v3007_v17  ;;  %v841_v13 = vadd.f32 %v2623_v36, %v771_v5  ;;  %v1044_v5 = vld [vmem:[%s3096_s23 + $0x170] sm:$0xff]  ;;  %v1045_v36 = vld [vmem:[%s3096_s23 + $0x178] sm:$0xff] }
 0x164   : > { %v3564_v3 = vadd.f32 %v2632_v35, %v840_v33  ;;  %526 = vperm.xlu1 %2903, %v3240_v11   ;;  %803 = vperm.xlu2 %2904, %v3222_v8   ;;  %v515_v39 = vpop.permute.xlu2 %514  ;;  %v2596_v33 = vsel %vm604_vm11, 1.0, %v3009_v29 }
 0x165   : > { %v3579_v43 = vadd.f32 %v2633_v40, %v841_v13  ;;  %vm533_vm4 = vcmp.eq.s32.totalorder %v515_v39, %v3302_v28  ;;  %1385 = vmatpush.msrb.mxu2 %v1044_v5  ;;  %1432 = vmatpush.msrb.mxu3 %v1045_v36 }
 0x166   : > { %2642 = vmatmul.msk.f32.gmra.mxu0 %vm1062_vm10, %v3564_v3  ;;  %2652 = vmatmul.msk.f32.gmra.mxu1 %vm1062_vm10, %v3564_v3  ;;  %v2585_v62 = vsel %vm533_vm4, 1.0, %v3009_v29 }
 0x167   : > { %2662 = vmatmul.msk.f32.gmra.mxu2 %vm1062_vm10, %v3564_v3  ;;  %2672 = vmatmul.msk.f32.gmra.mxu3 %vm1062_vm10, %v3564_v3  ;;  %v563_v2 = vadd.f32 %v2585_v62, %v3401_v30 }
 0x168   : > { %v798_v39 = vpop.permute.xlu0 %797 }
 0x16a   : > { %v512_v41 = vpop.permute.xlu1 %511 }
 0x16b   : > { %vm532_vm14 = vcmp.eq.s32.totalorder %v512_v41, %v3302_v28  ;;  %v1042_v41 = vld [vmem:[%s3096_s23 + $0x160] sm:$0xff] }
 0x16c   : > { %2905 = vset.pattern.permute.xlu1 %v3005_v15  ;;  %2906 = vset.pattern.permute.xlu2 %v3008_v18  ;;  %v2584_v47 = vsel %vm532_vm14, 1.0, %v3009_v29  ;;  %vm814_vm14 = vcmp.eq.s32.totalorder %v798_v39, %v3302_v28 }
 0x16d   : > { %596 = vperm.xlu1 %2905, %v3240_v11   ;;  %873 = vperm.xlu2 %2906, %v3222_v8   ;;  %v585_v45 = vpop.permute.xlu2 %584 }
 0x16e   : > { %2643 = vmatmul.msk.f32.gmra.mxu0 %vm1062_vm10, %v3579_v43  ;;  %2653 = vmatmul.msk.f32.gmra.mxu1 %vm1062_vm10, %v3579_v43  ;;  %vm603_vm5 = vcmp.eq.s32.totalorder %v585_v45, %v3302_v28  ;;  %v1043_v45 = vld [vmem:[%s3096_s23 + $0x168] sm:$0xff] }
 0x16f   : > { %2663 = vmatmul.msk.f32.gmra.mxu2 %vm1062_vm10, %v3579_v43  ;;  %2673 = vmatmul.msk.f32.gmra.mxu3 %vm1062_vm10, %v3579_v43  ;;  %v2595_v63 = vsel %vm603_vm5, 1.0, %v3009_v29 }
 0x170   : > { %v633_v19 = vadd.f32 %v2595_v63, %v563_v2  ;;  %1291 = vmatpush.msrb.mxu0 %v1042_v41  ;;  %1338 = vmatpush.msrb.mxu1 %v1043_v45 }
 0x173   : > { %v582_v15 = vpop.permute.xlu1 %581 }
 0x174   : > { %vm602_vm15 = vcmp.eq.s32.totalorder %v582_v15, %v3302_v28 }
 0x175   : > { %2908 = vset.pattern.permute.xlu1 %v3004_v14  ;;  %2909 = vset.pattern.permute.xlu2 %v3007_v17  ;;  %v2594_v48 = vsel %vm602_vm15, 1.0, %v3009_v29  ;;  %v562_v14 = vadd.f32 %v2584_v47, %v3319_v38  ;;  %v1036_v47 = vld [vmem:[%s3096_s23 + $0x130] sm:$0xff] }
 0x176   : > { %736 = vperm.xlu1 %2908, %v3240_v11   ;;  %806 = vperm.xlu2 %2909, %v3240_v11   ;;  %v725_v8 = vpop.permute.xlu2 %724 }
 0x177   : > { %v632_v17 = vadd.f32 %v2594_v48, %v562_v14  ;;  %vm743_vm7 = vcmp.eq.s32.totalorder %v725_v8, %v3302_v28  ;;  %v2626_v48 = vsel %vm814_vm14, 1.0, %v3009_v29  ;;  %1386 = vmatpush.msrb.mxu2 %v1036_v47 }
 0x178   : > { %v2615_v30 = vsel %vm743_vm7, 1.0, %v3009_v29 }
 0x179   : > { %v702_v10 = vadd.f32 %v2604_v49, %v632_v17 }
 0x17c   : > { %v722_v21 = vpop.permute.xlu1 %721 }
 0x17d   : > { %vm742_vm1 = vcmp.eq.s32.totalorder %v722_v21, %v3302_v28  ;;  %v1037_v21 = vld [vmem:[%s3096_s23 + $0x138] sm:$0xff] }
 0x17e   : > { %2910 = vset.pattern.permute.xlu1 %v3008_v18  ;;  %v2614_v54 = vsel %vm742_vm1, 1.0, %v3009_v29  ;;  %1433 = vmatpush.msrb.mxu3 %v1037_v21  ;;  %v927_v21 = vld [vmem:[#allocation2 + $0x148] sm:$0xff] }
 0x17f   : > { %876 = vperm.xlu1 %2910, %v3240_v11   ;;  %v795_v53 = vpop.permute.xlu2 %794  ;;  %v772_v38 = vadd.f32 %v2614_v54, %v702_v10  ;;  %v2634_v11 = vsel %vm882_vm2, 1.0, %v3009_v29 }
 0x180   : > { %vm813_vm8 = vcmp.eq.s32.totalorder %v795_v53, %v3302_v28 }
 0x181   : > { %v2625_v27 = vsel %vm813_vm8, 1.0, %v3009_v29 }
 0x185   : > { %v792_v42 = vpop.permute.xlu1 %791 }
 0x186   : > { %vm812_vm3 = vcmp.eq.s32.totalorder %v792_v42, %v3302_v28 }
 0x187   : > { %v2624_v18 = vsel %vm812_vm3, 1.0, %v3009_v29 }
 0x188   : > { %v842_v37 = vadd.f32 %v2624_v18, %v772_v38  ;;  %v658_v58 = vpop.permute.xlu2 %657  ;;  %v1034_v38 = vld [vmem:[%s3096_s23 + $0x120] sm:$0xff]  ;;  %v1028_v18 = vld [vmem:[%s3096_s23 + $0xf0] sm:$0xff] }
 0x189   : > { %vm674_vm13 = vcmp.eq.s32.totalorder %v658_v58, %v3302_v28  ;;  %1292 = vmatpush.msrb.mxu0 %v1034_v38  ;;  %v918_v58 = vld [vmem:[#allocation2 + $0xc8] sm:$0xff]  ;;  %1387 = vmatpush.msrb.mxu2 %v1028_v18  ;;  %v1010_v38 = vld [vmem:[%s3096_s23 + $0x60] sm:$0xff] }
 0x18a   : > { %v3614_v56 = vadd.f32 %v2634_v11, %v842_v37  ;;  %v2606_v13 = vsel %vm674_vm13, 1.0, %v3009_v29  ;;  %v1035_v11 = vld [vmem:[%s3096_s23 + $0x128] sm:$0xff]  ;;  %v1029_v37 = vld [vmem:[%s3096_s23 + $0xf8] sm:$0xff] }
 0x18b   : > { %1339 = vmatpush.msrb.mxu1 %v1035_v11  ;;  %1434 = vmatpush.msrb.mxu3 %v1029_v37  ;;  %v1011_v11 = vld [vmem:[%s3096_s23 + $0x68] sm:$0xff] }
 0x18c   : > { %2644 = vmatmul.msk.f32.gmra.mxu0 %vm1062_vm10, %v3614_v56  ;;  %2654 = vmatmul.msk.f32.gmra.mxu1 %vm1062_vm10, %v3614_v56 }
 0x18d   : > { %2664 = vmatmul.msk.f32.gmra.mxu2 %vm1062_vm10, %v3614_v56  ;;  %2674 = vmatmul.msk.f32.gmra.mxu3 %vm1062_vm10, %v3614_v56 }
 0x18e   : > { %v655_v52 = vpop.permute.xlu1 %654  ;;  %1293 = vmatpush.msrb.mxu0 %v1026_v6  ;;  %v1004_v6 = vld [vmem:[%s3096_s23 + $0x30] sm:$0xff] }
 0x18f   : > { %vm673_vm6 = vcmp.eq.s32.totalorder %v655_v52, %v3302_v28  ;;  %v919_v52 = vld [vmem:[#allocation2 + $0x8] sm:$0xff] }
 0x190   : > { %v2605_v7 = vsel %vm673_vm6, 1.0, %v3009_v29 }
 0x191   : > { %v3632_v4 = vpop.permute.xlu2 %520  ;;  %v703_v46 = vadd.f32 %v2605_v7, %v633_v19  ;;  %v1027_v7 = vld [vmem:[%s3096_s23 + $0xe8] sm:$0xff]  ;;  %v920_v19 = vld [vmem:[#allocation2 + $0x40] sm:$0xff] }
 0x192   : > { %1340 = vmatpush.msrb.mxu1 %v1027_v7  ;;  %vm535_vm1 = vcmp.eq.s32.totalorder %v3632_v4, %v3302_v28  ;;  %v1005_v7 = vld [vmem:[%s3096_s23 + $0x38] sm:$0xff] }
 0x193   : > { %v773_v59 = vadd.f32 %v2615_v30, %v703_v46  ;;  %v2587_v23 = vsel %vm535_vm1, 1.0, %v3009_v29 }
 0x194   : > { %v565_v4 = vadd.f32 %v2587_v23, %v3408_v34 }
 0x195   : > { %v843_v31 = vadd.f32 %v2625_v27, %v773_v59  ;;  %v1020_v59 = vld [vmem:[%s3096_s23 + $0xb0] sm:$0xff]  ;;  %v524_v27 = vpop.permute.xlu0 %523 }
 0x196   : > { %1388 = vmatpush.msrb.mxu2 %v1020_v59  ;;  %vm536_vm4 = vcmp.eq.s32.totalorder %v524_v27, %v3302_v28  ;;  %v935_v27 = vld [vmem:[#allocation2 + $0x30] sm:$0xff] }
 0x197   : > { %v518_v22 = vpop.permute.xlu1 %517  ;;  %v2588_v34 = vsel %vm536_vm4, 1.0, %v3009_v29 }
 0x198   : > { %vm534_vm9 = vcmp.eq.s32.totalorder %v518_v22, %v3302_v28  ;;  %v921_v22 = vld [vmem:[#allocation2 + $0x28] sm:$0xff] }
 0x199   : > { %v2586_v20 = vsel %vm534_vm9, 1.0, %v3009_v29 }
 0x19a   : > { %v868_v25 = vpop.permute.xlu2 %867  ;;  %v564_v32 = vadd.f32 %v2586_v20, %v3333_v44 }
 0x19b   : > { %vm884_vm15 = vcmp.eq.s32.totalorder %v868_v25, %v3302_v28  ;;  %v1021_v25 = vld [vmem:[%s3096_s23 + $0xb8] sm:$0xff] }
 0x19c   : > { %v634_v44 = vadd.f32 %v2596_v33, %v564_v32  ;;  %v2636_v49 = vsel %vm884_vm15, 1.0, %v3009_v29  ;;  %1435 = vmatpush.msrb.mxu3 %v1021_v25  ;;  %v1018_v32 = vld [vmem:[%s3096_s23 + $0xa0] sm:$0xff] }
 0x19d   : > { %1294 = vmatpush.msrb.mxu0 %v1018_v32  ;;  %v934_v25 = vld [vmem:[#allocation2 + $0x80] sm:$0xff] }
 0x19e   : > { %v704_v8 = vadd.f32 %v2606_v13, %v634_v44  ;;  %v734_v44 = vpop.permute.xlu0 %733  ;;  %v566_v13 = vadd.f32 %v2588_v34, %v3425_v51 }
 0x19f   : > { %vm746_vm9 = vcmp.eq.s32.totalorder %v734_v44, %v3302_v28  ;;  %1295 = vmatpush.msrb.mxu0 %v1010_v38 }
 0x1a0   : > { %v865_v16 = vpop.permute.xlu1 %864  ;;  %v2618_v18 = vsel %vm746_vm9, 1.0, %v3009_v29 }
 0x1a1   : > { %vm883_vm12 = vcmp.eq.s32.totalorder %v865_v16, %v3302_v28 }
 0x1a2   : > { %v2635_v9 = vsel %vm883_vm12, 1.0, %v3009_v29 }
 0x1a3   : > { %v3652_v35 = vadd.f32 %v2635_v9, %v843_v31  ;;  %v3666_v40 = vpop.permute.xlu2 %730  ;;  %v1019_v9 = vld [vmem:[%s3096_s23 + $0xa8] sm:$0xff] }
 0x1a4   : > { %vm745_vm5 = vcmp.eq.s32.totalorder %v3666_v40, %v3302_v28  ;;  %1341 = vmatpush.msrb.mxu1 %v1019_v9 }
 0x1a5   : > { %2645 = vmatmul.msk.f32.gmra.mxu0 %vm1062_vm10, %v3652_v35  ;;  %2655 = vmatmul.msk.f32.gmra.mxu1 %vm1062_vm10, %v3652_v35  ;;  %v2617_v5 = vsel %vm745_vm5, 1.0, %v3009_v29 }
 0x1a6   : > { %2665 = vmatmul.msk.f32.gmra.mxu2 %vm1062_vm10, %v3652_v35  ;;  %2675 = vmatmul.msk.f32.gmra.mxu3 %vm1062_vm10, %v3652_v35 }
 0x1a7   : > { %1342 = vmatpush.msrb.mxu1 %v1011_v11 }
 0x1a9   : > { %v728_v15 = vpop.permute.xlu1 %727 }
 0x1aa   : > { %vm744_vm0 = vcmp.eq.s32.totalorder %v728_v15, %v3302_v28  ;;  %v926_v15 = vld [vmem:[#allocation2 + $0xd8] sm:$0xff] }
 0x1ab   : > { %v2616_v14 = vsel %vm744_vm0, 1.0, %v3009_v29 }
 0x1ac   : > { %v774_v17 = vadd.f32 %v2616_v14, %v704_v8  ;;  %v3680_v10 = vpop.permute.xlu2 %593  ;;  %v1013_v14 = vld [vmem:[%s3096_s23 + $0x78] sm:$0xff] }
 0x1ad   : > { %vm606_vm6 = vcmp.eq.s32.totalorder %v3680_v10, %v3302_v28  ;;  %1436 = vmatpush.msrb.mxu3 %v1013_v14 }
 0x1ae   : > { %v844_v53 = vadd.f32 %v2626_v48, %v774_v17  ;;  %v2598_v36 = vsel %vm606_vm6, 1.0, %v3009_v29  ;;  %v1012_v48 = vld [vmem:[%s3096_s23 + $0x70] sm:$0xff] }
 0x1af   : > { %v636_v8 = vadd.f32 %v2598_v36, %v566_v13  ;;  %1389 = vmatpush.msrb.mxu2 %v1012_v48  ;;  %1437 = vmatpush.msrb.mxu3 %v1005_v7  ;;  %v937_v36 = vld [vmem:[#allocation2 + $0x160] sm:$0xff]  ;;  %v942_v13 = vld [vmem:[#allocation2 + $0x190] sm:$0xff] }
 0x1b0   : > { %v3678_v54 = vadd.f32 %v2636_v49, %v844_v53 }
 0x1b1   : > { %1390 = vmatpush.msrb.mxu2 %v1004_v6  ;;  %v953_v6 = vld [vmem:[#allocation2 + $0x198] sm:$0xff] }
 0x1b2   : > { %v591_v42 = vpop.permute.xlu1 %590  ;;  %2646 = vmatmul.msk.f32.gmra.mxu0 %vm1062_vm10, %v3678_v54  ;;  %2656 = vmatmul.msk.f32.gmra.mxu1 %vm1062_vm10, %v3678_v54 }
 0x1b3   : > { %2666 = vmatmul.msk.f32.gmra.mxu2 %vm1062_vm10, %v3678_v54  ;;  %2676 = vmatmul.msk.f32.gmra.mxu3 %vm1062_vm10, %v3678_v54  ;;  %vm605_vm2 = vcmp.eq.s32.totalorder %v591_v42, %v3302_v28 }
 0x1b4   : > { %v2597_v24 = vsel %vm605_vm2, 1.0, %v3009_v29 }
 0x1b5   : > { %v664_v2 = vpop.permute.xlu2 %663  ;;  %v635_v31 = vadd.f32 %v2597_v24, %v565_v4  ;;  %v667_v24 = vpop.permute.xlu0 %666 }
 0x1b6   : > { %vm676_vm8 = vcmp.eq.s32.totalorder %v664_v2, %v3302_v28  ;;  %vm677_vm0 = vcmp.eq.s32.totalorder %v667_v24, %v3302_v28 }
 0x1b7   : > { %v2608_v41 = vsel %vm676_vm8, 1.0, %v3009_v29  ;;  %v2609_v44 = vsel %vm677_vm0, 1.0, %v3009_v29 }
 0x1b8   : > { %v1110_v60 = vpop.f32.mrf.mxu0  ;;  %v1157_v61 = vpop.f32.mrf.mxu1  ;;  %v706_v51 = vadd.f32 %v2608_v41, %v636_v8 }
 0x1b9   : > { %v1469_v62 = vadd.f32 %v1110_v60, %v918_v58  ;;  %v1470_v63 = vadd.f32 %v1157_v61, %v919_v52 }
 0x1ba   : > { %v776_v60 = vadd.f32 %v2618_v18, %v706_v51 }
 0x1bb   : > { %1549 = vst [vmem:[#allocation2 + $0xc8] sm:$0xff] %v1469_v62  ;;  %v661_v55 = vpop.permute.xlu1 %660  ;;  %v928_v62 = vld [vmem:[#allocation2 + $0x158] sm:$0xff] }
 0x1bc   : > { %1550 = vst [vmem:[#allocation2 + $0x8] sm:$0xff] %v1470_v63  ;;  %vm675_vm3 = vcmp.eq.s32.totalorder %v661_v55, %v3302_v28  ;;  %v929_v63 = vld [vmem:[#allocation2 + $0x108] sm:$0xff] }
 0x1bd   : > { %v2607_v20 = vsel %vm675_vm3, 1.0, %v3009_v29 }
 0x1be   : > { %v804_v16 = vpop.permute.xlu2 %803  ;;  %v705_v33 = vadd.f32 %v2607_v20, %v635_v31 }
 0x1bf   : > { %v1204_v12 = vpop.f32.mrf.mxu2  ;;  %v1251_v26 = vpop.f32.mrf.mxu3  ;;  %vm816_vm12 = vcmp.eq.s32.totalorder %v804_v16, %v3302_v28 }
 0x1c0   : > { %v1471_v46 = vadd.f32 %v1204_v12, %v920_v19  ;;  %v1472_v30 = vadd.f32 %v1251_v26, %v921_v22  ;;  %v775_v40 = vadd.f32 %v2617_v5, %v705_v33  ;;  %v2628_v52 = vsel %vm816_vm12, 1.0, %v3009_v29  ;;  %v1002_v12 = vld [vmem:[%s3096_s23 + $0x20] sm:$0xff]  ;;  %v1003_v26 = vld [vmem:[%s3096_s23 + $0x28] sm:$0xff]  ;;  %v936_v5 = vld [vmem:[#allocation2 + $0x10] sm:$0xff] }
 0x1c1   : > { %v846_v2 = vadd.f32 %v2628_v52, %v776_v60  ;;  %1296 = vmatpush.msrb.mxu0 %v1002_v12  ;;  %1343 = vmatpush.msrb.mxu1 %v1003_v26  ;;  %v959_v12 = vld [vmem:[#allocation2 + $0x1b0] sm:$0xff] }
 0x1c2   : > { %1551 = vst [vmem:[#allocation2 + $0x40] sm:$0xff] %v1471_v46 }
 0x1c3   : > { %1552 = vst [vmem:[#allocation2 + $0x28] sm:$0xff] %v1472_v30 }
 0x1c4   : > { %v801_v57 = vpop.permute.xlu1 %800 }
 0x1c5   : > { %vm815_vm7 = vcmp.eq.s32.totalorder %v801_v57, %v3302_v28 }
 0x1c6   : > { %v2627_v39 = vsel %vm815_vm7, 1.0, %v3009_v29 }
 0x1c7   : > { %v845_v47 = vadd.f32 %v2627_v39, %v775_v40  ;;  %v874_v17 = vpop.permute.xlu2 %873  ;;  %v943_v40 = vld [vmem:[#allocation2 + $0x48] sm:$0xff] }
 0x1c8   : > { %vm886_vm13 = vcmp.eq.s32.totalorder %v874_v17, %v3302_v28 }
 0x1c9   : > { %v2638_v61 = vsel %vm886_vm13, 1.0, %v3009_v29 }
 0x1ca   : > { %v3749_v46 = vadd.f32 %v2638_v61, %v846_v2 }
 0x1cd   : > { %v871_v45 = vpop.permute.xlu1 %870 }
 0x1ce   : > { %vm885_vm11 = vcmp.eq.s32.totalorder %v871_v45, %v3302_v28 }
 0x1cf   : > { %v2637_v49 = vsel %vm885_vm11, 1.0, %v3009_v29 }
 0x1d0   : > { %v3727_v53 = vadd.f32 %v2637_v49, %v845_v47  ;;  %v1113_v10 = vpop.f32.mrf.mxu0  ;;  %v1160_v42 = vpop.f32.mrf.mxu1 }
 0x1d1   : > { %v1477_v37 = vadd.f32 %v1113_v10, %v926_v15  ;;  %v1478_v58 = vadd.f32 %v1160_v42, %v927_v21  ;;  %v807_v39 = vpop.permute.xlu2 %806  ;;  %v944_v10 = vld [vmem:[#allocation2 + $0x68] sm:$0xff]  ;;  %v945_v42 = vld [vmem:[#allocation2 + $0x238] sm:$0xff] }
 0x1d2   : > { %2647 = vmatmul.msk.f32.gmra.mxu0 %vm1062_vm10, %v3727_v53  ;;  %2657 = vmatmul.msk.f32.gmra.mxu1 %vm1062_vm10, %v3727_v53  ;;  %vm817_vm2 = vcmp.eq.s32.totalorder %v807_v39, %v3302_v28 }
 0x1d3   : > { %1557 = vst [vmem:[#allocation2 + $0xd8] sm:$0xff] %v1477_v37  ;;  %2667 = vmatmul.msk.f32.gmra.mxu2 %vm1062_vm10, %v3727_v53  ;;  %2677 = vmatmul.msk.f32.gmra.mxu3 %vm1062_vm10, %v3727_v53  ;;  %v2629_v51 = vsel %vm817_vm2, 1.0, %v3009_v29 }
 0x1d4   : > { %1558 = vst [vmem:[#allocation2 + $0x148] sm:$0xff] %v1478_v58 }
 0x1d6   : > { %v527_v55 = vpop.permute.xlu1 %526 }
 0x1d7   : > { %v1207_v19 = vpop.f32.mrf.mxu2  ;;  %v1254_v22 = vpop.f32.mrf.mxu3  ;;  %vm537_vm14 = vcmp.eq.s32.totalorder %v527_v55, %v3302_v28 }
 0x1d8   : > { %v1479_v30 = vadd.f32 %v1207_v19, %v928_v62  ;;  %v1480_v23 = vadd.f32 %v1254_v22, %v929_v63  ;;  %v2589_v4 = vsel %vm537_vm14, 1.0, %v3009_v29 }
 0x1d9   : > { %v567_v9 = vadd.f32 %v2589_v4, %v3347_v50 }
 0x1da   : > { %1559 = vst [vmem:[#allocation2 + $0x158] sm:$0xff] %v1479_v30  ;;  %2648 = vmatmul.msk.f32.gmra.mxu0 %vm1062_vm10, %v3749_v46  ;;  %2658 = vmatmul.msk.f32.gmra.mxu1 %vm1062_vm10, %v3749_v46 }
 0x1db   : > { %1560 = vst [vmem:[#allocation2 + $0x108] sm:$0xff] %v1480_v23  ;;  %2668 = vmatmul.msk.f32.gmra.mxu2 %vm1062_vm10, %v3749_v46  ;;  %2678 = vmatmul.msk.f32.gmra.mxu3 %vm1062_vm10, %v3749_v46 }
 0x1df   : > { %v597_v59 = vpop.permute.xlu1 %596 }
 0x1e0   : > { %vm607_vm15 = vcmp.eq.s32.totalorder %v597_v59, %v3302_v28 }
 0x1e1   : > { %v2599_v32 = vsel %vm607_vm15, 1.0, %v3009_v29 }
 0x1e2   : > { %v637_v33 = vadd.f32 %v2599_v32, %v567_v9  ;;  %v968_v9 = vld [vmem:[#allocation2 + $0xa0] sm:$0xff] }
 0x1e3   : > { %v1116_v57 = vpop.f32.mrf.mxu0  ;;  %v1163_v20 = vpop.f32.mrf.mxu1 }
 0x1e4   : > { %v1485_v16 = vadd.f32 %v1116_v57, %v934_v25  ;;  %v1486_v31 = vadd.f32 %v1163_v20, %v935_v27  ;;  %v707_v48 = vadd.f32 %v2609_v44, %v637_v33  ;;  %v966_v57 = vld [vmem:[#allocation2 + $0x78] sm:$0xff]  ;;  %v967_v20 = vld [vmem:[#allocation2 + $0x1f0] sm:$0xff] }
 0x1e5   : > { %v969_v33 = vld [vmem:[#allocation2 + $0x1f8] sm:$0xff] }
 0x1e6   : > { %1565 = vst [vmem:[#allocation2 + $0x80] sm:$0xff] %v1485_v16 }
 0x1e7   : > { %1566 = vst [vmem:[#allocation2 + $0x30] sm:$0xff] %v1486_v31 }
 0x1e8   : > { %v737_v34 = vpop.permute.xlu1 %736 }
 0x1e9   : > { %vm747_vm1 = vcmp.eq.s32.totalorder %v737_v34, %v3302_v28 }
 0x1ea   : > { %v1210_v41 = vpop.f32.mrf.mxu2  ;;  %v1257_v45 = vpop.f32.mrf.mxu3  ;;  %v2619_v15 = vsel %vm747_vm1, 1.0, %v3009_v29 }
 0x1eb   : > { %v1487_v50 = vadd.f32 %v1210_v41, %v936_v5  ;;  %v1488_v8 = vadd.f32 %v1257_v45, %v937_v36  ;;  %v1119_v47 = vpop.f32.mrf.mxu0  ;;  %v1166_v21 = vpop.f32.mrf.mxu1  ;;  %v777_v49 = vadd.f32 %v2619_v15, %v707_v48  ;;  %v977_v45 = vld [vmem:[#allocation2 + $0x278] sm:$0xff]  ;;  %v982_v15 = vld [vmem:[#allocation2 + $0xa8] sm:$0xff] }
 0x1ec   : > { %v1493_v14 = vadd.f32 %v1119_v47, %v942_v13  ;;  %v1494_v17 = vadd.f32 %v1166_v21, %v943_v40 }
 0x1ed   : > { %1567 = vst [vmem:[#allocation2 + $0x10] sm:$0xff] %v1487_v50  ;;  %v847_v11 = vadd.f32 %v2629_v51, %v777_v49  ;;  %v983_v50 = vld [vmem:[#allocation2 + $0x60] sm:$0xff] }
 0x1ee   : > { %1568 = vst [vmem:[#allocation2 + $0x160] sm:$0xff] %v1488_v8 }
 0x1ef   : > { %1573 = vst [vmem:[#allocation2 + $0x190] sm:$0xff] %v1493_v14 }
 0x1f0   : > { %1574 = vst [vmem:[#allocation2 + $0x48] sm:$0xff] %v1494_v17 }
 0x1f1   : > { %v877_v38 = vpop.permute.xlu1 %876 }
 0x1f2   : > { %vm887_vm3 = vcmp.eq.s32.totalorder %v877_v38, %v3302_v28  ;;  %v1213_v18 = vpop.f32.mrf.mxu2  ;;  %v1260_v37 = vpop.f32.mrf.mxu3  ;;  %v950_v28 = vld [vmem:[#allocation2 + $0xf8] sm:$0xff] }
 0x1f3   : > { %v2639_v58 = vsel %vm887_vm3, 1.0, %v3009_v29  ;;  %v1495_v52 = vadd.f32 %v1213_v18, %v944_v10  ;;  %v1496_v60 = vadd.f32 %v1260_v37, %v945_v42  ;;  %v951_v29 = vld [vmem:[#allocation2 + $0x98] sm:$0xff]  ;;  %v985_v42 = vld [vmem:[#allocation2 + $0x208] sm:$0xff] }
 0x1f4   : > { %v3772_v61 = vadd.f32 %v2639_v58, %v847_v11  ;;  %v984_v10 = vld [vmem:[#allocation2 + $0x138] sm:$0xff]  ;;  %v990_v58 = vld [vmem:[#allocation2 + $0x1c0] sm:$0xff] }
 0x1f5   : > { %1575 = vst [vmem:[#allocation2 + $0x68] sm:$0xff] %v1495_v52  ;;  %v991_v52 = vld [vmem:[#allocation2 + $0x230] sm:$0xff] }
 0x1f6   : > { %1576 = vst [vmem:[#allocation2 + $0x238] sm:$0xff] %v1496_v60  ;;  %2649 = vmatmul.msk.f32.gmra.mxu0 %vm1062_vm10, %v3772_v61  ;;  %2659 = vmatmul.msk.f32.gmra.mxu1 %vm1062_vm10, %v3772_v61 }
 0x1f7   : > { %2669 = vmatmul.msk.f32.gmra.mxu2 %vm1062_vm10, %v3772_v61  ;;  %2679 = vmatmul.msk.f32.gmra.mxu3 %vm1062_vm10, %v3772_v61 }
 0x1fe   : > { %2680 = vmatmul.msk.f32.vlgmr.msrb.gmra.mxu0 %vm1062_vm10, %v3479_v1  ;;  %2690 = vmatmul.msk.f32.vlgmr.msrb.gmra.mxu1 %vm1062_vm10, %v3479_v1 }
 0x1ff   : > { %2700 = vmatmul.msk.f32.vlgmr.msrb.gmra.mxu2 %vm1062_vm10, %v3479_v1  ;;  %2710 = vmatmul.msk.f32.vlgmr.msrb.gmra.mxu3 %vm1062_vm10, %v3479_v1  ;;  %v952_v1 = vld [vmem:[#allocation2 + $0xe0] sm:$0xff] }
 0x206   : > { %2681 = vmatmul.msk.f32.gmra.mxu0 %vm1062_vm10, %v3518_v0  ;;  %2691 = vmatmul.msk.f32.gmra.mxu1 %vm1062_vm10, %v3518_v0 }
 0x207   : > { %2701 = vmatmul.msk.f32.gmra.mxu2 %vm1062_vm10, %v3518_v0  ;;  %2711 = vmatmul.msk.f32.gmra.mxu3 %vm1062_vm10, %v3518_v0 }
 0x209   : > { %v1122_v62 = vpop.f32.mrf.mxu0  ;;  %v1169_v63 = vpop.f32.mrf.mxu1 }
 0x20a   : > { %v1501_v2 = vadd.f32 %v1122_v62, %v950_v28  ;;  %v1502_v55 = vadd.f32 %v1169_v63, %v951_v29  ;;  %v992_v62 = vld [vmem:[#allocation2 + $0x170] sm:$0xff] }
 0x20b   : > { %v993_v63 = vld [vmem:[#allocation2 + $0x150] sm:$0xff] }
 0x20c   : > { %1581 = vst [vmem:[#allocation2 + $0xf8] sm:$0xff] %v1501_v2  ;;  %v922_v2 = vld [vmem:[#allocation2 + $0xe8] sm:$0xff] }
 0x20d   : > { %1582 = vst [vmem:[#allocation2 + $0x98] sm:$0xff] %v1502_v55  ;;  %v923_v55 = vld [vmem:[#allocation2 + $0xf0] sm:$0xff] }
 0x20e   : > { %2682 = vmatmul.msk.f32.gmra.mxu0 %vm1062_vm10, %v3564_v3  ;;  %2692 = vmatmul.msk.f32.gmra.mxu1 %vm1062_vm10, %v3564_v3 }
 0x20f   : > { %2702 = vmatmul.msk.f32.gmra.mxu2 %vm1062_vm10, %v3564_v3  ;;  %2712 = vmatmul.msk.f32.gmra.mxu3 %vm1062_vm10, %v3564_v3  ;;  %v958_v3 = vld [vmem:[#allocation2] sm:$0xff] }
 0x210   : > { %v1216_v0 = vpop.f32.mrf.mxu2  ;;  %v1263_v7 = vpop.f32.mrf.mxu3 }
 0x211   : > { %v1503_v19 = vadd.f32 %v1216_v0, %v952_v1  ;;  %v1504_v22 = vadd.f32 %v1263_v7, %v953_v6 }
 0x213   : > { %1583 = vst [vmem:[#allocation2 + $0xe0] sm:$0xff] %v1503_v19 }
 0x214   : > { %1584 = vst [vmem:[#allocation2 + $0x198] sm:$0xff] %v1504_v22 }
 0x216   : > { %2683 = vmatmul.msk.f32.gmra.mxu0 %vm1062_vm10, %v3579_v43  ;;  %2693 = vmatmul.msk.f32.gmra.mxu1 %vm1062_vm10, %v3579_v43 }
 0x217   : > { %2703 = vmatmul.msk.f32.gmra.mxu2 %vm1062_vm10, %v3579_v43  ;;  %2713 = vmatmul.msk.f32.gmra.mxu3 %vm1062_vm10, %v3579_v43  ;;  %v960_v43 = vld [vmem:[#allocation2 + $0x90] sm:$0xff] }
 0x21e   : > { %2684 = vmatmul.msk.f32.gmra.mxu0 %vm1062_vm10, %v3614_v56  ;;  %2694 = vmatmul.msk.f32.gmra.mxu1 %vm1062_vm10, %v3614_v56 }
 0x21f   : > { %2704 = vmatmul.msk.f32.gmra.mxu2 %vm1062_vm10, %v3614_v56  ;;  %2714 = vmatmul.msk.f32.gmra.mxu3 %vm1062_vm10, %v3614_v56  ;;  %v961_v56 = vld [vmem:[#allocation2 + $0x270] sm:$0xff] }
 0x222   : > { %v1125_v26 = vpop.f32.mrf.mxu0  ;;  %v1172_v30 = vpop.f32.mrf.mxu1 }
 0x223   : > { %v1509_v23 = vadd.f32 %v1125_v26, %v958_v3  ;;  %v1510_v59 = vadd.f32 %v1172_v30, %v959_v12  ;;  %v924_v26 = vld [vmem:[#allocation2 + $0x70] sm:$0xff]  ;;  %v925_v30 = vld [vmem:[#allocation2 + $0x120] sm:$0xff] }
 0x225   : > { %1589 = vst [vmem:[#allocation2] sm:$0xff] %v1509_v23  ;;  %v930_v23 = vld [vmem:[#allocation2 + $0x220] sm:$0xff] }
 0x226   : > { %1590 = vst [vmem:[#allocation2 + $0x1b0] sm:$0xff] %v1510_v59  ;;  %2685 = vmatmul.msk.f32.gmra.mxu0 %vm1062_vm10, %v3652_v35  ;;  %2695 = vmatmul.msk.f32.gmra.mxu1 %vm1062_vm10, %v3652_v35  ;;  %v931_v59 = vld [vmem:[#allocation2 + $0xc0] sm:$0xff] }
 0x227   : > { %2705 = vmatmul.msk.f32.gmra.mxu2 %vm1062_vm10, %v3652_v35  ;;  %2715 = vmatmul.msk.f32.gmra.mxu3 %vm1062_vm10, %v3652_v35 }
 0x229   : > { %v1219_v25 = vpop.f32.mrf.mxu2  ;;  %v1266_v27 = vpop.f32.mrf.mxu3 }
 0x22a   : > { %v1511_v24 = vadd.f32 %v1219_v25, %v960_v43  ;;  %v1512_v4 = vadd.f32 %v1266_v27, %v961_v56 }
 0x22c   : > { %1591 = vst [vmem:[#allocation2 + $0x90] sm:$0xff] %v1511_v24 }
 0x22d   : > { %1592 = vst [vmem:[#allocation2 + $0x270] sm:$0xff] %v1512_v4 }
 0x22e   : > { %2686 = vmatmul.msk.f32.gmra.mxu0 %vm1062_vm10, %v3678_v54  ;;  %2696 = vmatmul.msk.f32.gmra.mxu1 %vm1062_vm10, %v3678_v54 }
 0x22f   : > { %2706 = vmatmul.msk.f32.gmra.mxu2 %vm1062_vm10, %v3678_v54  ;;  %2716 = vmatmul.msk.f32.gmra.mxu3 %vm1062_vm10, %v3678_v54  ;;  %v1128_v35 = vpop.f32.mrf.mxu0  ;;  %v1175_v16 = vpop.f32.mrf.mxu1  ;;  %v974_v54 = vld [vmem:[#allocation2 + $0x1b8] sm:$0xff] }
 0x230   : > { %v1517_v31 = vadd.f32 %v1128_v35, %v966_v57  ;;  %v1518_v32 = vadd.f32 %v1175_v16, %v967_v20  ;;  %v932_v35 = vld [vmem:[#allocation2 + $0x140] sm:$0xff] }
 0x231   : > { %v933_v16 = vld [vmem:[#allocation2 + $0x200] sm:$0xff] }
 0x232   : > { %1597 = vst [vmem:[#allocation2 + $0x78] sm:$0xff] %v1517_v31  ;;  %v938_v31 = vld [vmem:[#allocation2 + $0x1d8] sm:$0xff] }
 0x233   : > { %1598 = vst [vmem:[#allocation2 + $0x1f0] sm:$0xff] %v1518_v32  ;;  %v939_v32 = vld [vmem:[#allocation2 + $0x1a0] sm:$0xff] }
 0x236   : > { %v1222_v34 = vpop.f32.mrf.mxu2  ;;  %v1269_v5 = vpop.f32.mrf.mxu3  ;;  %2687 = vmatmul.msk.f32.gmra.mxu0 %vm1062_vm10, %v3727_v53  ;;  %2697 = vmatmul.msk.f32.gmra.mxu1 %vm1062_vm10, %v3727_v53 }
 0x237   : > { %v1519_v36 = vadd.f32 %v1222_v34, %v968_v9  ;;  %v1520_v44 = vadd.f32 %v1269_v5, %v969_v33  ;;  %2707 = vmatmul.msk.f32.gmra.mxu2 %vm1062_vm10, %v3727_v53  ;;  %2717 = vmatmul.msk.f32.gmra.mxu3 %vm1062_vm10, %v3727_v53  ;;  %v975_v53 = vld [vmem:[#allocation2 + $0x168] sm:$0xff] }
 0x239   : > { %1599 = vst [vmem:[#allocation2 + $0xa0] sm:$0xff] %v1519_v36 }
 0x23a   : > { %1600 = vst [vmem:[#allocation2 + $0x1f8] sm:$0xff] %v1520_v44 }
 0x23e   : > { %2688 = vmatmul.msk.f32.gmra.mxu0 %vm1062_vm10, %v3749_v46  ;;  %2698 = vmatmul.msk.f32.gmra.mxu1 %vm1062_vm10, %v3749_v46 }
 0x23f   : > { %2708 = vmatmul.msk.f32.gmra.mxu2 %vm1062_vm10, %v3749_v46  ;;  %2718 = vmatmul.msk.f32.gmra.mxu3 %vm1062_vm10, %v3749_v46  ;;  %v976_v46 = vld [vmem:[#allocation2 + $0xd0] sm:$0xff] }
 0x246   : > { %2689 = vmatmul.msk.f32.gmra.mxu0 %vm1062_vm10, %v3772_v61  ;;  %2699 = vmatmul.msk.f32.gmra.mxu1 %vm1062_vm10, %v3772_v61 }
 0x247   : > { %2709 = vmatmul.msk.f32.gmra.mxu2 %vm1062_vm10, %v3772_v61  ;;  %2719 = vmatmul.msk.f32.gmra.mxu3 %vm1062_vm10, %v3772_v61 }
 0x24f   : > { %v1131_v39 = vpop.f32.mrf.mxu0  ;;  %v1178_v13 = vpop.f32.mrf.mxu1 }
 0x250   : > { %v1525_v40 = vadd.f32 %v1131_v39, %v974_v54  ;;  %v1526_v41 = vadd.f32 %v1178_v13, %v975_v53  ;;  %v940_v39 = vld [vmem:[#allocation2 + $0x248] sm:$0xff]  ;;  %v941_v13 = vld [vmem:[#allocation2 + $0x218] sm:$0xff] }
 0x252   : > { %1605 = vst [vmem:[#allocation2 + $0x1b8] sm:$0xff] %v1525_v40  ;;  %v946_v40 = vld [vmem:[#allocation2 + $0x188] sm:$0xff] }
 0x253   : > { %1606 = vst [vmem:[#allocation2 + $0x168] sm:$0xff] %v1526_v41  ;;  %v947_v41 = vld [vmem:[#allocation2 + $0x250] sm:$0xff] }
 0x256   : > { %v1225_v8 = vpop.f32.mrf.mxu2  ;;  %v1272_v47 = vpop.f32.mrf.mxu3 }
 0x257   : > { %v1527_v21 = vadd.f32 %v1225_v8, %v976_v46  ;;  %v1528_v48 = vadd.f32 %v1272_v47, %v977_v45  ;;  %v1134_v14 = vpop.f32.mrf.mxu0  ;;  %v1181_v17 = vpop.f32.mrf.mxu1 }
 0x258   : > { %v1533_v49 = vadd.f32 %v1134_v14, %v982_v15  ;;  %v1534_v51 = vadd.f32 %v1181_v17, %v983_v50  ;;  %v948_v14 = vld [vmem:[#allocation2 + $0xb8] sm:$0xff]  ;;  %v949_v17 = vld [vmem:[#allocation2 + $0x268] sm:$0xff] }
 0x259   : > { %1607 = vst [vmem:[#allocation2 + $0xd0] sm:$0xff] %v1527_v21 }
 0x25a   : > { %1608 = vst [vmem:[#allocation2 + $0x278] sm:$0xff] %v1528_v48 }
 0x25b   : > { %1613 = vst [vmem:[#allocation2 + $0xa8] sm:$0xff] %v1533_v49  ;;  %v954_v49 = vld [vmem:[#allocation2 + $0x1d0] sm:$0xff] }
 0x25c   : > { %1614 = vst [vmem:[#allocation2 + $0x60] sm:$0xff] %v1534_v51  ;;  %v955_v51 = vld [vmem:[#allocation2 + $0x1e0] sm:$0xff] }
 0x25e   : > { %v1228_v38 = vpop.f32.mrf.mxu2  ;;  %v1275_v11 = vpop.f32.mrf.mxu3 }
 0x25f   : > { %v1535_v18 = vadd.f32 %v1228_v38, %v984_v10  ;;  %v1536_v37 = vadd.f32 %v1275_v11, %v985_v42 }
 0x261   : > { %1615 = vst [vmem:[#allocation2 + $0x138] sm:$0xff] %v1535_v18 }
 0x262   : > { %1616 = vst [vmem:[#allocation2 + $0x208] sm:$0xff] %v1536_v37 }
 0x273   : > { %v1137_v60 = vpop.f32.mrf.mxu0  ;;  %v1184_v61 = vpop.f32.mrf.mxu1 }
 0x274   : > { %v1541_v28 = vadd.f32 %v1137_v60, %v990_v58  ;;  %v1542_v29 = vadd.f32 %v1184_v61, %v991_v52  ;;  %v956_v60 = vld [vmem:[#allocation2 + $0x1a8] sm:$0xff] }
 0x275   : > { %v957_v61 = vld [vmem:[#allocation2 + $0x228] sm:$0xff] }
 0x276   : > { %1621 = vst [vmem:[#allocation2 + $0x1c0] sm:$0xff] %v1541_v28  ;;  %v962_v28 = vld [vmem:[#allocation2 + $0x1e8] sm:$0xff] }
 0x277   : > { %1622 = vst [vmem:[#allocation2 + $0x230] sm:$0xff] %v1542_v29  ;;  %v963_v29 = vld [vmem:[#allocation2 + $0x38] sm:$0xff] }
 0x27a   : > { %v1231_v1 = vpop.f32.mrf.mxu2  ;;  %v1278_v6 = vpop.f32.mrf.mxu3 }
 0x27b   : > { %v1543_v0 = vadd.f32 %v1231_v1, %v992_v62  ;;  %v1544_v7 = vadd.f32 %v1278_v6, %v993_v63  ;;  %v1298_v19 = vpop.f32.mrf.mxu0  ;;  %v1345_v22 = vpop.f32.mrf.mxu1 }
 0x27c   : > { %v1473_v3 = vadd.f32 %v1298_v19, %v922_v2  ;;  %v1474_v12 = vadd.f32 %v1345_v22, %v923_v55  ;;  %v964_v19 = vld [vmem:[#allocation2 + $0x1c8] sm:$0xff]  ;;  %v965_v22 = vld [vmem:[#allocation2 + $0x18] sm:$0xff] }
 0x27d   : > { %1623 = vst [vmem:[#allocation2 + $0x170] sm:$0xff] %v1543_v0 }
 0x27e   : > { %1624 = vst [vmem:[#allocation2 + $0x150] sm:$0xff] %v1544_v7 }
 0x27f   : > { %1553 = vst [vmem:[#allocation2 + $0xe8] sm:$0xff] %v1473_v3  ;;  %v970_v3 = vld [vmem:[#allocation2 + $0x58] sm:$0xff] }
 0x280   : > { %1554 = vst [vmem:[#allocation2 + $0xf0] sm:$0xff] %v1474_v12  ;;  %v971_v12 = vld [vmem:[#allocation2 + $0x258] sm:$0xff] }
 0x282   : > { %v1392_v43 = vpop.f32.mrf.mxu2  ;;  %v1439_v56 = vpop.f32.mrf.mxu3 }
 0x283   : > { %v1475_v25 = vadd.f32 %v1392_v43, %v924_v26  ;;  %v1476_v27 = vadd.f32 %v1439_v56, %v925_v30  ;;  %v1301_v24 = vpop.f32.mrf.mxu0  ;;  %v1348_v4 = vpop.f32.mrf.mxu1 }
 0x284   : > { %v1481_v57 = vadd.f32 %v1301_v24, %v930_v23  ;;  %v1482_v20 = vadd.f32 %v1348_v4, %v931_v59  ;;  %v972_v24 = vld [vmem:[#allocation2 + $0x260] sm:$0xff] }
 0x285   : > { %1555 = vst [vmem:[#allocation2 + $0x70] sm:$0xff] %v1475_v25  ;;  %v973_v4 = vld [vmem:[#allocation2 + $0x100] sm:$0xff] }
 0x286   : > { %1556 = vst [vmem:[#allocation2 + $0x120] sm:$0xff] %v1476_v27 }
 0x287   : > { %1561 = vst [vmem:[#allocation2 + $0x220] sm:$0xff] %v1481_v57  ;;  %v978_v57 = vld [vmem:[#allocation2 + $0x210] sm:$0xff] }
 0x288   : > { %1562 = vst [vmem:[#allocation2 + $0xc0] sm:$0xff] %v1482_v20  ;;  %v979_v20 = vld [vmem:[#allocation2 + $0x180] sm:$0xff] }
 0x28a   : > { %v1395_v9 = vpop.f32.mrf.mxu2  ;;  %v1442_v33 = vpop.f32.mrf.mxu3 }
 0x28b   : > { %v1483_v34 = vadd.f32 %v1395_v9, %v932_v35  ;;  %v1484_v5 = vadd.f32 %v1442_v33, %v933_v16  ;;  %v1304_v36 = vpop.f32.mrf.mxu0  ;;  %v1351_v44 = vpop.f32.mrf.mxu1 }
 0x28c   : > { %v1489_v54 = vadd.f32 %v1304_v36, %v938_v31  ;;  %v1490_v53 = vadd.f32 %v1351_v44, %v939_v32  ;;  %v980_v36 = vld [vmem:[#allocation2 + $0x130] sm:$0xff] }
 0x28d   : > { %1563 = vst [vmem:[#allocation2 + $0x140] sm:$0xff] %v1483_v34  ;;  %v981_v44 = vld [vmem:[#allocation2 + $0x110] sm:$0xff] }
 0x28e   : > { %1564 = vst [vmem:[#allocation2 + $0x200] sm:$0xff] %v1484_v5 }
 0x28f   : > { %1569 = vst [vmem:[#allocation2 + $0x1d8] sm:$0xff] %v1489_v54  ;;  %v986_v54 = vld [vmem:[#allocation2 + $0x240] sm:$0xff] }
 0x290   : > { %1570 = vst [vmem:[#allocation2 + $0x1a0] sm:$0xff] %v1490_v53  ;;  %v987_v53 = vld [vmem:[#allocation2 + $0x88] sm:$0xff] }
 0x292   : > { %v1398_v46 = vpop.f32.mrf.mxu2  ;;  %v1445_v45 = vpop.f32.mrf.mxu3 }
 0x293   : > { %v1491_v15 = vadd.f32 %v1398_v46, %v940_v39  ;;  %v1492_v50 = vadd.f32 %v1445_v45, %v941_v13  ;;  %v1307_v8 = vpop.f32.mrf.mxu0  ;;  %v1354_v47 = vpop.f32.mrf.mxu1 }
 0x294   : > { %v1497_v21 = vadd.f32 %v1307_v8, %v946_v40  ;;  %v1498_v48 = vadd.f32 %v1354_v47, %v947_v41  ;;  %v988_v8 = vld [vmem:[#allocation2 + $0x118] sm:$0xff]  ;;  %v989_v47 = vld [vmem:[#allocation2 + $0x128] sm:$0xff] }
 0x295   : > { %1571 = vst [vmem:[#allocation2 + $0x248] sm:$0xff] %v1491_v15 }
 0x296   : > { %1572 = vst [vmem:[#allocation2 + $0x218] sm:$0xff] %v1492_v50 }
 0x297   : > { %1577 = vst [vmem:[#allocation2 + $0x188] sm:$0xff] %v1497_v21  ;;  %v994_v21 = vld [vmem:[#allocation2 + $0x20] sm:$0xff] }
 0x298   : > { %1578 = vst [vmem:[#allocation2 + $0x250] sm:$0xff] %v1498_v48  ;;  %v995_v48 = vld [vmem:[#allocation2 + $0x178] sm:$0xff] }
 0x29a   : > { %v1401_v10 = vpop.f32.mrf.mxu2  ;;  %v1448_v42 = vpop.f32.mrf.mxu3 }
 0x29b   : > { %v1499_v38 = vadd.f32 %v1401_v10, %v948_v14  ;;  %v1500_v11 = vadd.f32 %v1448_v42, %v949_v17  ;;  %v1310_v18 = vpop.f32.mrf.mxu0  ;;  %v1357_v37 = vpop.f32.mrf.mxu1 }
 0x29c   : > { %v1505_v58 = vadd.f32 %v1310_v18, %v954_v49  ;;  %v1506_v52 = vadd.f32 %v1357_v37, %v955_v51  ;;  %v996_v18 = vld [vmem:[#allocation2 + $0x50] sm:$0xff] }
 0x29d   : > { %1579 = vst [vmem:[#allocation2 + $0xb8] sm:$0xff] %v1499_v38  ;;  %v997_v37 = vld [vmem:[#allocation2 + $0xb0] sm:$0xff] }
 0x29e   : > { %1580 = vst [vmem:[#allocation2 + $0x268] sm:$0xff] %v1500_v11 }
 0x29f   : > { %1585 = vst [vmem:[#allocation2 + $0x1d0] sm:$0xff] %v1505_v58 }
 0x2a0   : > { %1586 = vst [vmem:[#allocation2 + $0x1e0] sm:$0xff] %v1506_v52 }
 0x2a2   : > { %v1404_v62 = vpop.f32.mrf.mxu2  ;;  %v1451_v63 = vpop.f32.mrf.mxu3 }
 0x2a3   : > { %v1507_v2 = vadd.f32 %v1404_v62, %v956_v60  ;;  %v1508_v55 = vadd.f32 %v1451_v63, %v957_v61  ;;  %v1313_v1 = vpop.f32.mrf.mxu0  ;;  %v1360_v6 = vpop.f32.mrf.mxu1 }
 0x2a4   : > { %v1513_v0 = vadd.f32 %v1313_v1, %v962_v28  ;;  %v1514_v7 = vadd.f32 %v1360_v6, %v963_v29 }
 0x2a5   : > { %1587 = vst [vmem:[#allocation2 + $0x1a8] sm:$0xff] %v1507_v2 }
 0x2a6   : > { %1588 = vst [vmem:[#allocation2 + $0x228] sm:$0xff] %v1508_v55 }
 0x2a7   : > { %1593 = vst [vmem:[#allocation2 + $0x1e8] sm:$0xff] %v1513_v0 }
 0x2a8   : > { %1594 = vst [vmem:[#allocation2 + $0x38] sm:$0xff] %v1514_v7 }
 0x2aa   : > { %v1407_v26 = vpop.f32.mrf.mxu2  ;;  %v1454_v30 = vpop.f32.mrf.mxu3 }
 0x2ab   : > { %v1515_v23 = vadd.f32 %v1407_v26, %v964_v19  ;;  %v1516_v59 = vadd.f32 %v1454_v30, %v965_v22  ;;  %v1316_v43 = vpop.f32.mrf.mxu0  ;;  %v1363_v56 = vpop.f32.mrf.mxu1 }
 0x2ac   : > { %v1521_v25 = vadd.f32 %v1316_v43, %v970_v3  ;;  %v1522_v27 = vadd.f32 %v1363_v56, %v971_v12 }
 0x2ad   : > { %1595 = vst [vmem:[#allocation2 + $0x1c8] sm:$0xff] %v1515_v23 }
 0x2ae   : > { %1596 = vst [vmem:[#allocation2 + $0x18] sm:$0xff] %v1516_v59 }
 0x2af   : > { %1601 = vst [vmem:[#allocation2 + $0x58] sm:$0xff] %v1521_v25 }
 0x2b0   : > { %1602 = vst [vmem:[#allocation2 + $0x258] sm:$0xff] %v1522_v27 }
 0x2b2   : > { %v1410_v35 = vpop.f32.mrf.mxu2  ;;  %v1457_v16 = vpop.f32.mrf.mxu3 }
 0x2b3   : > { %v1523_v31 = vadd.f32 %v1410_v35, %v972_v24  ;;  %v1524_v32 = vadd.f32 %v1457_v16, %v973_v4  ;;  %v1319_v9 = vpop.f32.mrf.mxu0  ;;  %v1366_v33 = vpop.f32.mrf.mxu1 }
 0x2b4   : > { %v1529_v34 = vadd.f32 %v1319_v9, %v978_v57  ;;  %v1530_v5 = vadd.f32 %v1366_v33, %v979_v20 }
 0x2b5   : > { %1603 = vst [vmem:[#allocation2 + $0x260] sm:$0xff] %v1523_v31 }
 0x2b6   : > { %1604 = vst [vmem:[#allocation2 + $0x100] sm:$0xff] %v1524_v32 }
 0x2b7   : > { %1609 = vst [vmem:[#allocation2 + $0x210] sm:$0xff] %v1529_v34 }
 0x2b8   : > { %1610 = vst [vmem:[#allocation2 + $0x180] sm:$0xff] %v1530_v5 }
 0x2ba   : > { %v1413_v39 = vpop.f32.mrf.mxu2  ;;  %v1460_v13 = vpop.f32.mrf.mxu3 }
 0x2bb   : > { %v1531_v40 = vadd.f32 %v1413_v39, %v980_v36  ;;  %v1532_v41 = vadd.f32 %v1460_v13, %v981_v44  ;;  %v1322_v46 = vpop.f32.mrf.mxu0  ;;  %v1369_v45 = vpop.f32.mrf.mxu1 }
 0x2bc   : > { %v1537_v15 = vadd.f32 %v1322_v46, %v986_v54  ;;  %v1538_v50 = vadd.f32 %v1369_v45, %v987_v53 }
 0x2bd   : > { %1611 = vst [vmem:[#allocation2 + $0x130] sm:$0xff] %v1531_v40 }
 0x2be   : > { %1612 = vst [vmem:[#allocation2 + $0x110] sm:$0xff] %v1532_v41 }
 0x2bf   : > { %1617 = vst [vmem:[#allocation2 + $0x240] sm:$0xff] %v1537_v15 }
 0x2c0   : > { %1618 = vst [vmem:[#allocation2 + $0x88] sm:$0xff] %v1538_v50 }
 0x2c2   : > { %v1416_v14 = vpop.f32.mrf.mxu2  ;;  %v1463_v17 = vpop.f32.mrf.mxu3 }
 0x2c3   : > { %v1539_v49 = vadd.f32 %v1416_v14, %v988_v8  ;;  %v1540_v51 = vadd.f32 %v1463_v17, %v989_v47  ;;  %v1325_v10 = vpop.f32.mrf.mxu0  ;;  %v1372_v42 = vpop.f32.mrf.mxu1 }
 0x2c4   : > { %v1545_v38 = vadd.f32 %v1325_v10, %v994_v21  ;;  %v1546_v11 = vadd.f32 %v1372_v42, %v995_v48 }
 0x2c5   : > { %1619 = vst [vmem:[#allocation2 + $0x118] sm:$0xff] %v1539_v49 }
 0x2c6   : > { %1620 = vst [vmem:[#allocation2 + $0x128] sm:$0xff] %v1540_v51 }
 0x2c7   : > { %1625 = vst [vmem:[#allocation2 + $0x20] sm:$0xff] %v1545_v38 }
 0x2c8   : > { %1626 = vst [vmem:[#allocation2 + $0x178] sm:$0xff] %v1546_v11 }
 0x2ca   : > { %v1419_v58 = vpop.f32.mrf.mxu2  ;;  %v1466_v52 = vpop.f32.mrf.mxu3  ;;  %1632 = sbr.rel (%p2720_p0) target bundleno = 1246 (0x4de), region = 48 }
 0x2cb   : > { %v1547_v60 = vadd.f32 %v1419_v58, %v996_v18  ;;  %v1548_v61 = vadd.f32 %v1466_v52, %v997_v37 }
 0x2cd   : > { %1627 = vst [vmem:[#allocation2 + $0x50] sm:$0xff] %v1547_v60 }
 0x2ce   : > { %1628 = vst [vmem:[#allocation2 + $0xb0] sm:$0xff] %v1548_v61 }
 0x2cf   : > { %v1665_v28 = vld [vmem:[#allocation2 + $0xf8] sm:$0xff]  ;;  %v1713_v29 = vld [vmem:[%s4328_s2] sm:$0xff]  ;;  %v1657_v55 = vld [vmem:[#allocation2 + $0x190] sm:$0xff]  ;;  %vm1893_vm10 = vcmask 326656   ;;  %vm2107_vm4 = vcmask 1041408  }
 0x2d0   : > { %v1667_v62 = vld [vmem:[#allocation2 + $0xe0] sm:$0xff]  ;;  %v3866_v63 = vperm.slane %v1713_v29, 0  ;;  %v3868_v2 = vperm.slane %v1713_v29, 2  ;;  %v1666_v1 = vld [vmem:[#allocation2 + $0x98] sm:$0xff]  ;;  %v3870_v6 = vperm.slane %v1713_v29, 1  ;;  %v1659_v0 = vld [vmem:[#allocation2 + $0x68] sm:$0xff] }
 0x2d1   : > { %v1668_v7 = vld [vmem:[#allocation2 + $0x198] sm:$0xff]  ;;  %v3872_v19 = vperm.slane %v1713_v29, 3  ;;  %v1649_v22 = vld [vmem:[#allocation2 + $0x80] sm:$0xff]  ;;  %v1658_v3 = vld [vmem:[#allocation2 + $0x48] sm:$0xff]  ;;  %v3874_v12 = vperm.slane %v1713_v29, 6  ;;  %v3876_v26 = vperm.slane %v1713_v29, 4 }
 0x2d2   : > { %v1763_v30 = vadd.f32 %v3866_v63, %v1665_v28  ;;  %v1765_v23 = vadd.f32 %v3868_v2, %v1667_v62  ;;  %v1755_v59 = vadd.f32 %v3866_v63, %v1657_v55  ;;  %v1764_v43 = vadd.f32 %v3870_v6, %v1666_v1  ;;  %v1651_v56 = vld [vmem:[#allocation2 + $0x10] sm:$0xff]  ;;  %v1660_v57 = vld [vmem:[#allocation2 + $0x238] sm:$0xff]  ;;  %v1652_v34 = vld [vmem:[#allocation2 + $0x160] sm:$0xff] }
 0x2d3   : > { %v1757_v25 = vadd.f32 %v3868_v2, %v1659_v0  ;;  %v1766_v27 = vadd.f32 %v3872_v19, %v1668_v7  ;;  %v1747_v24 = vadd.f32 %v3866_v63, %v1649_v22  ;;  %v1756_v4 = vadd.f32 %v3870_v6, %v1658_v3  ;;  %v1641_v20 = vld [vmem:[#allocation2 + $0xd8] sm:$0xff]  ;;  %v1650_v35 = vld [vmem:[#allocation2 + $0x30] sm:$0xff]  ;;  %v1633_v53 = vld [vmem:[#allocation2 + $0xc8] sm:$0xff] }
 0x2d4   : > { %v1843_v16 = vmax.f32 %v1763_v30, 0.0  ;;  %v1845_v31 = vmax.f32 %v1765_v23, 0.0  ;;  %v1835_v32 = vmax.f32 %v1755_v59, 0.0  ;;  %v1844_v9 = vmax.f32 %v1764_v43, 0.0  ;;  %v1643_v33 = vld [vmem:[#allocation2 + $0x158] sm:$0xff]  ;;  %v1642_v41 = vld [vmem:[#allocation2 + $0x148] sm:$0xff] }
 0x2d5   : > { %v1837_v5 = vmax.f32 %v1757_v25, 0.0  ;;  %v1846_v36 = vmax.f32 %v1766_v27, 0.0  ;;  %v1827_v44 = vmax.f32 %v1747_v24, 0.0  ;;  %v1836_v54 = vmax.f32 %v1756_v4, 0.0  ;;  %v1635_v8 = vld [vmem:[#allocation2 + $0x40] sm:$0xff]  ;;  %v1644_v47 = vld [vmem:[#allocation2 + $0x108] sm:$0xff] }
 0x2d6   : > { %1911 = vmatpush.msra.mxu0 %v1843_v16  ;;  %1957 = vmatpush.msra.mxu2 %v1845_v31  ;;  %v1749_v39 = vadd.f32 %v3868_v2, %v1651_v56  ;;  %v1758_v13 = vadd.f32 %v3872_v19, %v1660_v57  ;;  %v1739_v40 = vadd.f32 %v3866_v63, %v1641_v20  ;;  %v3889_v46 = vperm.slane %v1713_v29, 7  ;;  %v1671_v21 = vld [vmem:[#allocation2 + $0x1a8] sm:$0xff]  ;;  %v1669_v38 = vld [vmem:[#allocation2 + $0x1d0] sm:$0xff]  ;;  %v1670_v62 = vld [vmem:[#allocation2 + $0x1e0] sm:$0xff] }
 0x2d7   : > { %1934 = vmatpush.msra.mxu1 %v1844_v9  ;;  %1980 = vmatpush.msra.mxu3 %v1846_v36  ;;  %v1748_v45 = vadd.f32 %v3870_v6, %v1650_v35  ;;  %v1741_v15 = vadd.f32 %v3868_v2, %v1643_v33  ;;  %v1750_v50 = vadd.f32 %v3872_v19, %v1652_v34  ;;  %v3894_v48 = vperm.slane %v1713_v29, 5  ;;  %v1634_v10 = vld [vmem:[#allocation2 + $0x8] sm:$0xff]  ;;  %v1663_v22 = vld [vmem:[#allocation2 + $0xb8] sm:$0xff]  ;;  %v3907_v43 = vld [vmem:[%s4329_s3] sm:$0xff] }
 0x2d8   : > { %1912 = vmatpush.msra.mxu0 %v1835_v32  ;;  %1958 = vmatpush.msra.mxu2 %v1837_v5  ;;  %v1829_v14 = vmax.f32 %v1749_v39, 0.0  ;;  %v1838_v17 = vmax.f32 %v1758_v13, 0.0  ;;  %v1819_v49 = vmax.f32 %v1739_v40, 0.0  ;;  %v1731_v51 = vadd.f32 %v3866_v63, %v1633_v53  ;;  %v1636_v42 = vld [vmem:[#allocation2 + $0x28] sm:$0xff]  ;;  %v1662_v27 = vld [vmem:[#allocation2 + $0x250] sm:$0xff]  ;;  %v1653_v35 = vld [vmem:[#allocation2 + $0x1d8] sm:$0xff] }
 0x2d9   : > { %1935 = vmatpush.msra.mxu1 %v1836_v54  ;;  %v1828_v11 = vmax.f32 %v1748_v45, 0.0  ;;  %v1821_v18 = vmax.f32 %v1741_v15, 0.0  ;;  %v1830_v37 = vmax.f32 %v1750_v50, 0.0  ;;  %v1740_v58 = vadd.f32 %v3870_v6, %v1642_v41  ;;  %v1672_v52 = vld [vmem:[#allocation2 + $0x228] sm:$0xff]  ;;  %v1656_v16 = vld [vmem:[#allocation2 + $0x218] sm:$0xff]  ;;  %v1647_v33 = vld [vmem:[#allocation2 + $0x140] sm:$0xff] }
 0x2da   : > { %1913 = vmatpush.msra.mxu0 %v1827_v44  ;;  %1959 = vmatpush.msra.mxu2 %v1829_v14  ;;  %v1811_v60 = vmax.f32 %v1731_v51, 0.0  ;;  %v1733_v61 = vadd.f32 %v3868_v2, %v1635_v8  ;;  %v1742_v28 = vadd.f32 %v3872_v19, %v1644_v47  ;;  %v1769_v29 = vadd.f32 %v3874_v12, %v1671_v21  ;;  %v1661_v3 = vld [vmem:[#allocation2 + $0x188] sm:$0xff]  ;;  %v1654_v54 = vld [vmem:[#allocation2 + $0x1a0] sm:$0xff]  ;;  %v1639_v47 = vld [vmem:[#allocation2 + $0x70] sm:$0xff] }
 0x2db   : > { %1981 = vmatpush.msra.mxu3 %v1838_v17  ;;  %1936 = vmatpush.msra.mxu1 %v1828_v11  ;;  %v1820_v55 = vmax.f32 %v1740_v58, 0.0  ;;  %v1732_v1 = vadd.f32 %v3870_v6, %v1634_v10  ;;  %v1734_v0 = vadd.f32 %v3872_v19, %v1636_v42  ;;  %v1767_v7 = vadd.f32 %v3876_v26, %v1669_v38  ;;  %v1664_v30 = vld [vmem:[#allocation2 + $0x268] sm:$0xff]  ;;  %v1645_v41 = vld [vmem:[#allocation2 + $0x220] sm:$0xff] }
 0x2dc   : > { %1914 = vmatpush.msra.mxu0 %v1819_v49  ;;  %1960 = vmatpush.msra.mxu2 %v1821_v18  ;;  %v1813_v23 = vmax.f32 %v1733_v61, 0.0  ;;  %v1822_v59 = vmax.f32 %v1742_v28, 0.0  ;;  %v1770_v56 = vadd.f32 %v3889_v46, %v1672_v52  ;;  %v1655_v25 = vld [vmem:[#allocation2 + $0x248] sm:$0xff]  ;;  %v1849_v24 = vmax.f32 %v1769_v29, 0.0  ;;  %v1648_v45 = vld [vmem:[#allocation2 + $0x200] sm:$0xff]  ;;  %v1638_v18 = vld [vmem:[#allocation2 + $0xf0] sm:$0xff] }
 0x2dd   : > { %1982 = vmatpush.msra.mxu3 %v1830_v37  ;;  %1937 = vmatpush.msra.mxu1 %v1820_v55  ;;  %v1812_v4 = vmax.f32 %v1732_v1, 0.0  ;;  %v1814_v57 = vmax.f32 %v1734_v0, 0.0  ;;  %v1768_v20 = vadd.f32 %v3894_v48, %v1670_v62  ;;  %v1761_v31 = vadd.f32 %v3874_v12, %v1663_v22  ;;  %v1646_v21 = vld [vmem:[#allocation2 + $0xc0] sm:$0xff]  ;;  %v1637_v51 = vld [vmem:[#allocation2 + $0xe8] sm:$0xff]  ;;  %v1707_v37 = vld [vmem:[#allocation2 + $0x170] sm:$0xff] }
 0x2de   : > { %1915 = vmatpush.msra.mxu0 %v1811_v60  ;;  %1961 = vmatpush.msra.mxu2 %v1813_v23  ;;  %v1759_v32 = vadd.f32 %v3876_v26, %v1661_v3  ;;  %v1762_v9 = vadd.f32 %v3889_v46, %v1664_v30  ;;  %v1847_v34 = vmax.f32 %v1767_v7, 0.0  ;;  %v1850_v5 = vmax.f32 %v1770_v56, 0.0  ;;  %v1640_v10 = vld [vmem:[#allocation2 + $0x120] sm:$0xff]  ;;  %v3933_v58 = vld [vmem:[%s4329_s3 + $0x8] sm:$0x3]  ;;  %v1708_v28 = vld [vmem:[#allocation2 + $0x150] sm:$0xff] }
 0x2df   : > { %1983 = vmatpush.msra.mxu3 %v1822_v59  ;;  %2721 = vmatmul.msk.f32.vlgmr.msra.gmra.mxu0 %vm1893_vm10, %v3907_v43  ;;  %v1753_v36 = vadd.f32 %v3874_v12, %v1655_v25  ;;  %v1760_v44 = vadd.f32 %v3894_v48, %v1662_v27  ;;  %v1848_v53 = vmax.f32 %v1768_v20, 0.0  ;;  %v1841_v39 = vmax.f32 %v1761_v31, 0.0  ;;  %v1705_v0 = vld [vmem:[#allocation2 + $0x1c0] sm:$0xff]  ;;  %v1699_v3 = vld [vmem:[#allocation2 + $0x138] sm:$0xff]  ;;  %v1706_v30 = vld [vmem:[#allocation2 + $0x230] sm:$0xff] }
 0x2e0   : > { %2725 = vmatmul.msk.f32.vlgmr.msra.gmra.mxu2 %vm1893_vm10, %v3907_v43  ;;  %1938 = vmatpush.msra.mxu1 %v1812_v4  ;;  %v1751_v13 = vadd.f32 %v3876_v26, %v1653_v35  ;;  %v1754_v40 = vadd.f32 %v3889_v46, %v1656_v16  ;;  %v1839_v15 = vmax.f32 %v1759_v32, 0.0  ;;  %v1842_v50 = vmax.f32 %v1762_v9, 0.0  ;;  %v1697_v4 = vld [vmem:[#allocation2 + $0xa8] sm:$0xff]  ;;  %v1698_v9 = vld [vmem:[#allocation2 + $0x60] sm:$0xff] }
 0x2e1   : > { %2049 = vmatpush.msrb.mxu2 %v1849_v24  ;;  %1984 = vmatpush.msra.mxu3 %v1814_v57  ;;  %v1745_v8 = vadd.f32 %v3874_v12, %v1647_v33  ;;  %v1833_v14 = vmax.f32 %v1753_v36, 0.0  ;;  %v1840_v17 = vmax.f32 %v1760_v44, 0.0  ;;  %v1752_v49 = vadd.f32 %v3894_v48, %v1654_v54  ;;  %v1691_v57 = vld [vmem:[#allocation2 + $0xd0] sm:$0xff]  ;;  %v1700_v32 = vld [vmem:[#allocation2 + $0x208] sm:$0xff]  ;;  %v1683_v36 = vld [vmem:[#allocation2 + $0xa0] sm:$0xff] }
 0x2e2   : > { %2723 = vmatmul.msk.f32.vlgmr.msra.gmra.mxu1 %vm1893_vm10, %v3907_v43  ;;  %2727 = vmatmul.msk.f32.vlgmr.msra.gmra.mxu3 %vm1893_vm10, %v3907_v43  ;;  %v1834_v42 = vmax.f32 %v1754_v40, 0.0  ;;  %v1743_v38 = vadd.f32 %v3876_v26, %v1645_v41  ;;  %v1746_v11 = vadd.f32 %v3889_v46, %v1648_v45  ;;  %v1831_v52 = vmax.f32 %v1751_v13, 0.0  ;;  %v1690_v13 = vld [vmem:[#allocation2 + $0x168] sm:$0xff] }
 0x2e3   : > { %2003 = vmatpush.msrb.mxu0 %v1847_v34  ;;  %2072 = vmatpush.msrb.mxu3 %v1850_v5  ;;  %v1737_v60 = vadd.f32 %v3874_v12, %v1639_v47  ;;  %v1744_v61 = vadd.f32 %v3894_v48, %v1646_v21  ;;  %v1825_v29 = vmax.f32 %v1745_v8, 0.0  ;;  %v1832_v62 = vmax.f32 %v1752_v49, 0.0  ;;  %v1689_v5 = vld [vmem:[#allocation2 + $0x1b8] sm:$0xff] }
 0x2e4   : > { %2026 = vmatpush.msrb.mxu1 %v1848_v53  ;;  %2050 = vmatpush.msrb.mxu2 %v1841_v39  ;;  %v1735_v55 = vadd.f32 %v3876_v26, %v1637_v51  ;;  %v1738_v1 = vadd.f32 %v3889_v46, %v1640_v10  ;;  %v1736_v7 = vadd.f32 %v3894_v48, %v1638_v18  ;;  %v1823_v23 = vmax.f32 %v1743_v38, 0.0  ;;  %v1692_v39 = vld [vmem:[#allocation2 + $0x278] sm:$0xff]  ;;  %v1682_v10 = vld [vmem:[#allocation2 + $0x1f0] sm:$0xff] }
 0x2e5   : > { %2004 = vmatpush.msrb.mxu0 %v1839_v15  ;;  %2073 = vmatpush.msrb.mxu3 %v1842_v50  ;;  %v1805_v22 = vadd.f32 %v3868_v2, %v1707_v37  ;;  %v1826_v59 = vmax.f32 %v1746_v11, 0.0  ;;  %v1806_v56 = vadd.f32 %v3872_v19, %v1708_v28  ;;  %v1817_v25 = vmax.f32 %v1737_v60, 0.0  ;;  %v1675_v15 = vld [vmem:[#allocation2 + $0x90] sm:$0xff]  ;;  %v1684_v51 = vld [vmem:[#allocation2 + $0x1f8] sm:$0xff]  ;;  %v1673_v60 = vld [vmem:[#allocation2] sm:$0xff] }
 0x2e6   : > { %2051 = vmatpush.msrb.mxu2 %v1833_v14  ;;  %2027 = vmatpush.msrb.mxu1 %v1840_v17  ;;  %v1824_v27 = vmax.f32 %v1744_v61, 0.0  ;;  %v1803_v24 = vadd.f32 %v3866_v63, %v1705_v0  ;;  %v1815_v20 = vmax.f32 %v1735_v55, 0.0  ;;  %v1818_v35 = vmax.f32 %v1738_v1, 0.0  ;;  %v1681_v14 = vld [vmem:[#allocation2 + $0x78] sm:$0xff]  ;;  %v1676_v61 = vld [vmem:[#allocation2 + $0x270] sm:$0xff] }
 0x2e7   : > { %2722 = vmatmul.msk.f32.gmra.mxu0 %vm1893_vm10, %v3933_v58  ;;  %2074 = vmatpush.msrb.mxu3 %v1834_v42  ;;  %v1797_v16 = vadd.f32 %v3868_v2, %v1699_v3  ;;  %v1804_v31 = vadd.f32 %v3870_v6, %v1706_v30  ;;  %v1816_v33 = vmax.f32 %v1736_v7, 0.0  ;;  %v1885_v34 = vmax.f32 %v1805_v22, 0.0  ;;  %v1674_v1 = vld [vmem:[#allocation2 + $0x1b0] sm:$0xff]  ;;  %v1709_v22 = vld [vmem:[#allocation2 + $0x20] sm:$0xff] }
 0x2e8   : > { %2726 = vmatmul.msk.f32.gmra.mxu2 %vm1893_vm10, %v3933_v58  ;;  %2005 = vmatpush.msrb.mxu0 %v1831_v52  ;;  %v1886_v44 = vmax.f32 %v1806_v56, 0.0  ;;  %v1795_v54 = vadd.f32 %v3866_v63, %v1697_v4  ;;  %v1789_v53 = vadd.f32 %v3868_v2, %v1691_v57  ;;  %v1883_v40 = vmax.f32 %v1803_v24, 0.0  ;;  %v1712_v3 = vld [vmem:[#allocation2 + $0xb0] sm:$0xff]  ;;  %v1703_v56 = vld [vmem:[#allocation2 + $0x118] sm:$0xff]  ;;  %v1704_v57 = vld [vmem:[#allocation2 + $0x128] sm:$0xff] }
 0x2e9   : > { %2052 = vmatpush.msrb.mxu2 %v1825_v29  ;;  %2028 = vmatpush.msrb.mxu1 %v1832_v62  ;;  %v1798_v41 = vadd.f32 %v3872_v19, %v1700_v32  ;;  %v1796_v45 = vadd.f32 %v3870_v6, %v1698_v9  ;;  %v1877_v50 = vmax.f32 %v1797_v16, 0.0  ;;  %v1884_v8 = vmax.f32 %v1804_v31, 0.0  ;;  %v1701_v31 = vld [vmem:[#allocation2 + $0x240] sm:$0xff]  ;;  %v1695_v9 = vld [vmem:[#allocation2 + $0x130] sm:$0xff] }
 0x2ea   : > { %2724 = vmatmul.msk.f32.gmra.mxu1 %vm1893_vm10, %v3933_v58  ;;  %2728 = vmatmul.msk.f32.gmra.mxu3 %vm1893_vm10, %v3933_v58  ;;  %v1787_v47 = vadd.f32 %v3866_v63, %v1689_v5  ;;  %v1781_v21 = vadd.f32 %v3868_v2, %v1683_v36  ;;  %v1790_v17 = vadd.f32 %v3872_v19, %v1692_v39  ;;  %v1875_v42 = vmax.f32 %v1795_v54, 0.0  ;;  %v1687_v39 = vld [vmem:[#allocation2 + $0x260] sm:$0xff] }
 0x2eb   : > { %2006 = vmatpush.msrb.mxu0 %v1823_v23  ;;  %2075 = vmatpush.msrb.mxu3 %v1826_v59  ;;  %v1788_v49 = vadd.f32 %v3870_v6, %v1690_v13  ;;  %v1869_v38 = vmax.f32 %v1789_v53, 0.0  ;;  %v1773_v11 = vadd.f32 %v3868_v2, %v1675_v15  ;;  %v1878_v18 = vmax.f32 %v1798_v41, 0.0  ;;  %v1711_v2 = vld [vmem:[#allocation2 + $0x50] sm:$0xff] }
 0x2ec   : > { %2053 = vmatpush.msrb.mxu2 %v1817_v25  ;;  %2029 = vmatpush.msrb.mxu1 %v1824_v27  ;;  %v1876_v37 = vmax.f32 %v1796_v45, 0.0  ;;  %v1779_v52 = vadd.f32 %v3866_v63, %v1681_v14  ;;  %v1867_v28 = vmax.f32 %v1787_v47, 0.0  ;;  %v1861_v29 = vmax.f32 %v1781_v21, 0.0  ;;  %v1710_v25 = vld [vmem:[#allocation2 + $0x178] sm:$0xff]  ;;  %v1693_v53 = vld [vmem:[#allocation2 + $0x210] sm:$0xff]  ;;  %v1679_v14 = vld [vmem:[#allocation2 + $0x1c8] sm:$0xff] }
 0x2ed   : > { %2007 = vmatpush.msrb.mxu0 %v1815_v20  ;;  %2076 = vmatpush.msrb.mxu3 %v1818_v35  ;;  %v1782_v62 = vadd.f32 %v3872_v19, %v1684_v51  ;;  %v1780_v55 = vadd.f32 %v3870_v6, %v1682_v10  ;;  %v1870_v0 = vmax.f32 %v1790_v17, 0.0  ;;  %v1868_v7 = vmax.f32 %v1788_v49, 0.0  ;;  %v1696_v15 = vld [vmem:[#allocation2 + $0x110] sm:$0xff]  ;;  %v1685_v21 = vld [vmem:[#allocation2 + $0x58] sm:$0xff]  ;;  %v1688_v10 = vld [vmem:[#allocation2 + $0x100] sm:$0xff] }
 0x2ee   : > { %2030 = vmatpush.msrb.mxu1 %v1816_v33  ;;  %2236 = vmatpush.msra.mxu2 %v1885_v34  ;;  %v1853_v30 = vmax.f32 %v1773_v11, 0.0  ;;  %v1771_v23 = vadd.f32 %v3866_v63, %v1673_v60  ;;  %v1774_v59 = vadd.f32 %v3872_v19, %v1676_v61  ;;  %v1859_v27 = vmax.f32 %v1779_v52, 0.0 }
 0x2ef   : > { %2729 = vmatmul.msk.f32.vlgmr.msrb.gmra.mxu0 %vm1893_vm10, %v3907_v43  ;;  %2259 = vmatpush.msra.mxu3 %v1886_v44  ;;  %v1772_v24 = vadd.f32 %v3870_v6, %v1674_v1  ;;  %v1809_v4 = vadd.f32 %v3874_v12, %v1711_v2  ;;  %v1862_v20 = vmax.f32 %v1782_v62, 0.0  ;;  %v1860_v35 = vmax.f32 %v1780_v55, 0.0  ;;  %v1702_v6 = vld [vmem:[#allocation2 + $0x88] sm:$0xff]  ;;  %v1680_v55 = vld [vmem:[#allocation2 + $0x18] sm:$0xff] }
 0x2f0   : > { %2733 = vmatmul.msk.f32.vlgmr.msrb.gmra.mxu2 %vm1893_vm10, %v3907_v43  ;;  %2190 = vmatpush.msra.mxu0 %v1883_v40  ;;  %v1807_v16 = vadd.f32 %v3876_v26, %v1709_v22  ;;  %v1810_v63 = vadd.f32 %v3889_v46, %v1712_v3  ;;  %v1801_v19 = vadd.f32 %v3874_v12, %v1703_v56  ;;  %v1851_v33 = vmax.f32 %v1771_v23, 0.0  ;;  %v1678_v1 = vld [vmem:[#allocation2 + $0x38] sm:$0xff] }
 0x2f1   : > { %2237 = vmatpush.msra.mxu2 %v1877_v50  ;;  %2213 = vmatpush.msra.mxu1 %v1884_v8  ;;  %v1808_v32 = vadd.f32 %v3894_v48, %v1710_v25  ;;  %v1854_v34 = vmax.f32 %v1774_v59, 0.0  ;;  %v1802_v5 = vadd.f32 %v3889_v46, %v1704_v57  ;;  %v1852_v36 = vmax.f32 %v1772_v24, 0.0  ;;  %v1694_v50 = vld [vmem:[#allocation2 + $0x180] sm:$0xff] }
 0x2f2   : > { %2731 = vmatmul.msk.f32.vlgmr.msrb.gmra.mxu1 %vm1893_vm10, %v3907_v43  ;;  %2735 = vmatmul.msk.f32.vlgmr.msrb.gmra.mxu3 %vm1893_vm10, %v3907_v43  ;;  %v1889_v44 = vmax.f32 %v1809_v4, 0.0  ;;  %v1799_v54 = vadd.f32 %v3876_v26, %v1701_v31  ;;  %v1887_v13 = vmax.f32 %v1807_v16, 0.0  ;;  %v1890_v40 = vmax.f32 %v1810_v63, 0.0 }
 0x2f3   : > { %2191 = vmatpush.msra.mxu0 %v1875_v42  ;;  %2238 = vmatpush.msra.mxu2 %v1869_v38  ;;  %v1793_v41 = vadd.f32 %v3874_v12, %v1695_v9  ;;  %v1800_v45 = vadd.f32 %v3894_v48, %v1702_v6  ;;  %v1881_v8 = vmax.f32 %v1801_v19, 0.0  ;;  %v1888_v47 = vmax.f32 %v1808_v32, 0.0  ;;  %v1686_v42 = vld [vmem:[#allocation2 + $0x258] sm:$0xff] }
 0x2f4   : > { %2260 = vmatpush.msra.mxu3 %v1878_v18  ;;  %2214 = vmatpush.msra.mxu1 %v1876_v37  ;;  %v1882_v17 = vmax.f32 %v1802_v5, 0.0  ;;  %v1791_v49 = vadd.f32 %v3876_v26, %v1693_v53  ;;  %v1785_v51 = vadd.f32 %v3874_v12, %v1687_v39  ;;  %v1879_v38 = vmax.f32 %v1799_v54, 0.0 }
 0x2f5   : > { %2192 = vmatpush.msra.mxu0 %v1867_v28  ;;  %2239 = vmatpush.msra.mxu2 %v1861_v29  ;;  %v1794_v11 = vadd.f32 %v3889_v46, %v1696_v15  ;;  %v1792_v18 = vadd.f32 %v3894_v48, %v1694_v50  ;;  %v1873_v37 = vmax.f32 %v1793_v41, 0.0  ;;  %v1880_v52 = vmax.f32 %v1800_v45, 0.0  ;;  %v1677_v28 = vld [vmem:[#allocation2 + $0x1e8] sm:$0xff] }
 0x2f6   : > { %2261 = vmatpush.msra.mxu3 %v1870_v0  ;;  %2215 = vmatpush.msra.mxu1 %v1868_v7  ;;  %v1783_v60 = vadd.f32 %v3876_v26, %v1685_v21  ;;  %v1777_v61 = vadd.f32 %v3874_v12, %v1679_v14  ;;  %v1786_v29 = vadd.f32 %v3889_v46, %v1688_v10  ;;  %v1871_v2 = vmax.f32 %v1791_v49, 0.0 }
 0x2f7   : > { %2730 = vmatmul.msk.f32.gmra.mxu0 %vm1893_vm10, %v3933_v58  ;;  %2240 = vmatpush.msra.mxu2 %v1853_v30  ;;  %v1784_v62 = vadd.f32 %v3894_v48, %v1686_v42  ;;  %v1865_v0 = vmax.f32 %v1785_v51, 0.0  ;;  %v1874_v12 = vmax.f32 %v1794_v11, 0.0  ;;  %v1872_v7 = vmax.f32 %v1792_v18, 0.0 }
 0x2f8   : > { %2734 = vmatmul.msk.f32.gmra.mxu2 %vm1893_vm10, %v3933_v58  ;;  %2193 = vmatpush.msra.mxu0 %v1859_v27  ;;  %v1775_v22 = vadd.f32 %v3876_v26, %v1677_v28  ;;  %v1863_v3 = vmax.f32 %v1783_v60, 0.0  ;;  %v1857_v30 = vmax.f32 %v1777_v61, 0.0  ;;  %v1778_v23 = vadd.f32 %v3889_v46, %v1680_v55 }
 0x2f9   : > { %2262 = vmatpush.msra.mxu3 %v1862_v20  ;;  %2216 = vmatpush.msra.mxu1 %v1860_v35  ;;  %v1776_v59 = vadd.f32 %v3894_v48, %v1678_v1  ;;  %v1866_v56 = vmax.f32 %v1786_v29, 0.0  ;;  %v1864_v25 = vmax.f32 %v1784_v62, 0.0 }
 0x2fa   : > { %2736 = vmatmul.msk.f32.gmra.mxu3 %vm1893_vm10, %v3933_v58  ;;  %2732 = vmatmul.msk.f32.gmra.mxu1 %vm1893_vm10, %v3933_v58  ;;  %v1855_v26 = vmax.f32 %v1775_v22, 0.0  ;;  %v1858_v27 = vmax.f32 %v1778_v23, 0.0 }
 0x2fb   : > { %2194 = vmatpush.msra.mxu0 %v1851_v33  ;;  %2263 = vmatpush.msra.mxu3 %v1854_v34  ;;  %v1856_v24 = vmax.f32 %v1776_v59, 0.0 }
 0x2fc   : > { %2217 = vmatpush.msra.mxu1 %v1852_v36  ;;  %2328 = vmatpush.msrb.mxu2 %v1889_v44 }
 0x2fd   : > { %2282 = vmatpush.msrb.mxu0 %v1887_v13  ;;  %2351 = vmatpush.msrb.mxu3 %v1890_v40 }
 0x2fe   : > { %2329 = vmatpush.msrb.mxu2 %v1881_v8  ;;  %2305 = vmatpush.msrb.mxu1 %v1888_v47 }
 0x2ff   : > { %2737 = vmatmul.msk.f32.vlgmr.msra.gmra.mxu0 %vm1893_vm10, %v3907_v43  ;;  %2352 = vmatpush.msrb.mxu3 %v1882_v17 }
 0x300   : > { %2741 = vmatmul.msk.f32.vlgmr.msra.gmra.mxu2 %vm1893_vm10, %v3907_v43  ;;  %2283 = vmatpush.msrb.mxu0 %v1879_v38 }
 0x301   : > { %2330 = vmatpush.msrb.mxu2 %v1873_v37  ;;  %2306 = vmatpush.msrb.mxu1 %v1880_v52 }
 0x302   : > { %2743 = vmatmul.msk.f32.vlgmr.msra.gmra.mxu3 %vm1893_vm10, %v3907_v43  ;;  %2739 = vmatmul.msk.f32.vlgmr.msra.gmra.mxu1 %vm1893_vm10, %v3907_v43 }
 0x303   : > { %2284 = vmatpush.msrb.mxu0 %v1871_v2  ;;  %2331 = vmatpush.msrb.mxu2 %v1865_v0 }
 0x304   : > { %2353 = vmatpush.msrb.mxu3 %v1874_v12  ;;  %2307 = vmatpush.msrb.mxu1 %v1872_v7 }
 0x305   : > { %2285 = vmatpush.msrb.mxu0 %v1863_v3  ;;  %2332 = vmatpush.msrb.mxu2 %v1857_v30 }
 0x306   : > { %2354 = vmatpush.msrb.mxu3 %v1866_v56  ;;  %2308 = vmatpush.msrb.mxu1 %v1864_v25 }
 0x307   : > { %2738 = vmatmul.msk.f32.gmra.mxu0 %vm1893_vm10, %v3933_v58 }
 0x308   : > { %2742 = vmatmul.msk.f32.gmra.mxu2 %vm1893_vm10, %v3933_v58  ;;  %2286 = vmatpush.msrb.mxu0 %v1855_v26 }
 0x309   : > { %2355 = vmatpush.msrb.mxu3 %v1858_v27  ;;  %2309 = vmatpush.msrb.mxu1 %v1856_v24 }
 0x30a   : > { %2744 = vmatmul.msk.f32.gmra.mxu3 %vm1893_vm10, %v3933_v58  ;;  %2740 = vmatmul.msk.f32.gmra.mxu1 %vm1893_vm10, %v3933_v58 }
 0x30f   : > { %2745 = vmatmul.msk.f32.vlgmr.msrb.gmra.mxu0 %vm1893_vm10, %v3907_v43 }
 0x310   : > { %2749 = vmatmul.msk.f32.vlgmr.msrb.gmra.mxu2 %vm1893_vm10, %v3907_v43 }
 0x312   : > { %2751 = vmatmul.msk.f32.vlgmr.msrb.gmra.mxu3 %vm1893_vm10, %v3907_v43  ;;  %2747 = vmatmul.msk.f32.vlgmr.msrb.gmra.mxu1 %vm1893_vm10, %v3907_v43 }
 0x317   : > { %2746 = vmatmul.msk.f32.gmra.mxu0 %vm1893_vm10, %v3933_v58 }
 0x318   : > { %2750 = vmatmul.msk.f32.gmra.mxu2 %vm1893_vm10, %v3933_v58 }
 0x31a   : > { %2752 = vmatmul.msk.f32.gmra.mxu3 %vm1893_vm10, %v3933_v58  ;;  %2748 = vmatmul.msk.f32.gmra.mxu1 %vm1893_vm10, %v3933_v58 }
 0x35c   : > { %v4036_v46 = vpop.f32.mrf.mxu0 }
 0x35d   : > { %v2084_v43 = vmul.f32 %v4036_v46, %v4036_v46 }
 0x35f   : > { %v4038_v48 = vpop.f32.mrf.mxu1 }
 0x360   : > { %v2085_v57 = vmul.f32 %v4038_v48, %v4038_v48 }
 0x362   : > { %v2100_v63 = vadd.f32 %v2085_v57, %v2084_v43 }
 0x363   : > { %v4040_v4 = vpop.f32.mrf.mxu2 }
 0x364   : > { %v4046_v20 = vpop.f32.mrf.mxu0  ;;  %v2086_v16 = vmul.f32 %v4040_v4, %v4040_v4 }
 0x365   : > { %v4048_v35 = vpop.f32.mrf.mxu3  ;;  %v2092_v40 = vmul.f32 %v4046_v20, %v4046_v20 }
 0x366   : > { %v2101_v31 = vadd.f32 %v2100_v63, %v2086_v16  ;;  %v2087_v19 = vmul.f32 %v4048_v35, %v4048_v35 }
 0x367   : > { %v4052_v58 = vpop.f32.mrf.mxu1  ;;  %v2108_v21 = vsel %vm2107_vm4, %v2092_v40, 0.0 }
 0x368   : > { %v2102_v34 = vadd.f32 %v2101_v31, %v2087_v19  ;;  %v2093_v50 = vmul.f32 %v4052_v58, %v4052_v58 }
 0x36a   : > { %v2110_v49 = vsel %vm2107_vm4, %v2093_v50, 0.0 }
 0x36b   : > { %v4056_v32 = vpop.f32.mrf.mxu2 }
 0x36c   : > { %v4058_v9 = vpop.f32.mrf.mxu0  ;;  %v2094_v14 = vmul.f32 %v4056_v32, %v4056_v32 }
 0x36d   : > { %v4060_v6 = vpop.f32.mrf.mxu3  ;;  %v2088_v33 = vmul.f32 %v4058_v9, %v4058_v9 }
 0x36e   : > { %v2095_v51 = vmul.f32 %v4060_v6, %v4060_v6  ;;  %v2112_v18 = vsel %vm2107_vm4, %v2094_v14, 0.0 }
 0x36f   : > { %v4064_v5 = vpop.f32.mrf.mxu1  ;;  %v2103_v36 = vadd.f32 %v2102_v34, %v2088_v33 }
 0x370   : > { %v2089_v44 = vmul.f32 %v4064_v5, %v4064_v5  ;;  %v2114_v61 = vsel %vm2107_vm4, %v2095_v51, 0.0 }
 0x372   : > { %v2104_v53 = vadd.f32 %v2103_v36, %v2089_v44 }
 0x373   : > { %v4068_v54 = vpop.f32.mrf.mxu2 }
 0x374   : > { %v2090_v39 = vmul.f32 %v4068_v54, %v4068_v54  ;;  %v4072_v13 = vpop.f32.mrf.mxu0 }
 0x375   : > { %v4076_v41 = vpop.f32.mrf.mxu3  ;;  %v2096_v10 = vmul.f32 %v4072_v13, %v4072_v13 }
 0x376   : > { %v2105_v45 = vadd.f32 %v2104_v53, %v2090_v39  ;;  %v2091_v15 = vmul.f32 %v4076_v41, %v4076_v41 }
 0x377   : > { %v4082_v8 = vpop.f32.mrf.mxu1  ;;  %v2116_v28 = vsel %vm2107_vm4, %v2096_v10, 0.0 }
 0x378   : > { %v2106_v47 = vadd.f32 %v2105_v45, %v2091_v15  ;;  %v2097_v37 = vmul.f32 %v4082_v8, %v4082_v8 }
 0x37a   : > { %v2109_v17 = vadd.f32 %v2108_v21, %v2106_v47  ;;  %v2118_v0 = vsel %vm2107_vm4, %v2097_v37, 0.0 }
 0x37b   : > { %v4092_v42 = vpop.f32.mrf.mxu2 }
 0x37c   : > { %v2111_v38 = vadd.f32 %v2110_v49, %v2109_v17  ;;  %v4094_v11 = vpop.f32.mrf.mxu0  ;;  %v2098_v29 = vmul.f32 %v4092_v42, %v4092_v42 }
 0x37d   : > { %v4099_v52 = vpop.f32.mrf.mxu3  ;;  %v2363_v62 = vmul.f32 %v4094_v11, %v4094_v11 }
 0x37e   : > { %v2113_v60 = vadd.f32 %v2112_v18, %v2111_v38  ;;  %v2099_v12 = vmul.f32 %v4099_v52, %v4099_v52  ;;  %v2120_v22 = vsel %vm2107_vm4, %v2098_v29, 0.0 }
 0x37f   : > { %v4107_v55 = vpop.f32.mrf.mxu1 }
 0x380   : > { %v2115_v1 = vadd.f32 %v2114_v61, %v2113_v60  ;;  %v2364_v2 = vmul.f32 %v4107_v55, %v4107_v55  ;;  %v2122_v25 = vsel %vm2107_vm4, %v2099_v12, 0.0 }
 0x382   : > { %v2117_v7 = vadd.f32 %v2116_v28, %v2115_v1  ;;  %v2379_v3 = vadd.f32 %v2364_v2, %v2363_v62 }
 0x383   : > { %v4115_v30 = vpop.f32.mrf.mxu2 }
 0x384   : > { %v2119_v23 = vadd.f32 %v2118_v0, %v2117_v7  ;;  %v2365_v59 = vmul.f32 %v4115_v30, %v4115_v30  ;;  %v4119_v56 = vpop.f32.mrf.mxu0 }
 0x385   : > { %v4122_v26 = vpop.f32.mrf.mxu3  ;;  %v2371_v40 = vmul.f32 %v4119_v56, %v4119_v56 }
 0x386   : > { %v2121_v27 = vadd.f32 %v2120_v22, %v2119_v23  ;;  %v2380_v24 = vadd.f32 %v2379_v3, %v2365_v59  ;;  %v2366_v43 = vmul.f32 %v4122_v26, %v4122_v26 }
 0x387   : > { %v4126_v57 = vpop.f32.mrf.mxu1  ;;  %v2386_v17 = vsel %vm2107_vm4, %v2371_v40, 0.0 }
 0x388   : > { %v2123_v16 = vadd.f32 %v2122_v25, %v2121_v27  ;;  %v2381_v63 = vadd.f32 %v2380_v24, %v2366_v43  ;;  %v2372_v50 = vmul.f32 %v4126_v57, %v4126_v57 }
 0x38a   : > { %2124 = vadd.xlane.f32.xlu0 %v2123_v16  ;;  %v2388_v38 = vsel %vm2107_vm4, %v2372_v50, 0.0 }
 0x38b   : > { %v4128_v31 = vpop.f32.mrf.mxu2 }
 0x38c   : > { %v4130_v19 = vpop.f32.mrf.mxu0  ;;  %v2373_v49 = vmul.f32 %v4128_v31, %v4128_v31 }
 0x38d   : > { %v4132_v33 = vpop.f32.mrf.mxu3  ;;  %v2367_v34 = vmul.f32 %v4130_v19, %v4130_v19 }
 0x38e   : > { %v2374_v18 = vmul.f32 %v4132_v33, %v4132_v33  ;;  %v2390_v61 = vsel %vm2107_vm4, %v2373_v49, 0.0 }
 0x38f   : > { %v2382_v36 = vadd.f32 %v2381_v63, %v2367_v34  ;;  %v4136_v44 = vpop.f32.mrf.mxu1 }
 0x390   : > { %v2368_v53 = vmul.f32 %v4136_v44, %v4136_v44  ;;  %v2392_v1 = vsel %vm2107_vm4, %v2374_v18, 0.0 }
 0x392   : > { %v2383_v39 = vadd.f32 %v2382_v36, %v2368_v53 }
 0x393   : > { %v4142_v45 = vpop.f32.mrf.mxu2 }
 0x394   : > { %v2369_v15 = vmul.f32 %v4142_v45, %v4142_v45  ;;  %v4155_v10 = vpop.f32.mrf.mxu0 }
 0x395   : > { %v4148_v47 = vpop.f32.mrf.mxu3  ;;  %v2375_v28 = vmul.f32 %v4155_v10, %v4155_v10 }
 0x396   : > { %v2384_v21 = vadd.f32 %v2383_v39, %v2369_v15  ;;  %v2370_v14 = vmul.f32 %v4148_v47, %v4148_v47 }
 0x397   : > { %v4160_v60 = vpop.f32.mrf.mxu1  ;;  %v2394_v7 = vsel %vm2107_vm4, %v2375_v28, 0.0 }
 0x398   : > { %v2385_v51 = vadd.f32 %v2384_v21, %v2370_v14  ;;  %v2376_v2 = vmul.f32 %v4160_v60, %v4160_v60 }
 0x39a   : > { %v2387_v37 = vadd.f32 %v2386_v17, %v2385_v51  ;;  %v2396_v23 = vsel %vm2107_vm4, %v2376_v2, 0.0 }
 0x39b   : > { %v4165_v62 = vpop.f32.mrf.mxu2 }
 0x39c   : > { %v2389_v29 = vadd.f32 %v2388_v38, %v2387_v37  ;;  %v2377_v22 = vmul.f32 %v4165_v62, %v4165_v62 }
 0x39d   : > { %v4170_v12 = vpop.f32.mrf.mxu3 }
 0x39e   : > { %v2391_v0 = vadd.f32 %v2390_v61, %v2389_v29  ;;  %v2378_v59 = vmul.f32 %v4170_v12, %v4170_v12  ;;  %v2398_v27 = vsel %vm2107_vm4, %v2377_v22, 0.0 }
 0x3a0   : > { %v2393_v3 = vadd.f32 %v2392_v1, %v2391_v0  ;;  %v2400_v43 = vsel %vm2107_vm4, %v2378_v59, 0.0 }
 0x3a2   : > { %v2395_v25 = vadd.f32 %v2394_v7, %v2393_v3 }
 0x3a4   : > { %v2397_v24 = vadd.f32 %v2396_v23, %v2395_v25 }
 0x3a6   : > { %v2399_v16 = vadd.f32 %v2398_v27, %v2397_v24 }
 0x3a8   : > { %v2401_v63 = vadd.f32 %v2400_v43, %v2399_v16 }
 0x3aa   : > { %2402 = vadd.xlane.f32.xlu0 %v2401_v63 }
 0x3fd   : > { %v2125_v34 = vpop.xlane.xlu0 %2124 }
 0x3fe   : > { %v2126_v36 = vrot.slane %v2125_v34, 4 }
 0x400   : > { %v2127_v53 = vadd.f32 %v2126_v36, %v2125_v34 }
 0x402   : > { %v2128_v39 = vrot.slane %v2127_v53, 2 }
 0x404   : > { %v2129_v40 = vadd.f32 %v2128_v39, %v2127_v53 }
 0x406   : > { %v2130_v15 = vrot.slane %v2129_v40, 1 }
 0x408   : > { %v2131_v50 = vadd.f32 %v2130_v15, %v2129_v40 }
 0x40a   : > { %2775 = vpush %v2131_v50 }
 0x41d   : > { %v2403_v21 = vpop.xlane.xlu0 %2402 }
 0x41e   : > { %v2404_v14 = vrot.slane %v2403_v21, 4 }
 0x420   : > { %v2405_v49 = vadd.f32 %v2404_v14, %v2403_v21 }
 0x422   : > { %v2406_v51 = vrot.slane %v2405_v49, 2 }
 0x424   : > { %v2407_v37 = vadd.f32 %v2406_v51, %v2405_v49 }
 0x426   : > { %v2408_v1 = vrot.slane %v2407_v37, 1 }
 0x428   : > { %v2409_v7 = vadd.f32 %v2408_v1, %v2407_v37 }
 0x43b   : > { %s2776_s6 = spop %2775 }
 0x43c   : > { %s2133_s7 = sadd.f32 1.0, %s2776_s6 }
 0x43e   : > { %v2134_v17 = vstv %s2133_s7 }
 0x43f   : > { %2912 = vrsqrt.f32 %v2134_v17  ;;  %vm2141_vm6 = vweird.f32 %v2134_v17 }
 0x445   : > { %v2913_v38 = vpop.eup %2912 }
 0x446   : > { %v2136_v18 = vmul.f32 %v2913_v38, %v2134_v17  ;;  %vm2142_vm5 = vweird.f32 %v2913_v38 }
 0x447   : > { %vm2143_vm7 = vmor %vm2141_vm6, %vm2142_vm5 }
 0x448   : > { %v2137_v61 = vmul.f32 %v2913_v38, %v2136_v18 }
 0x44a   : > { %v2138_v28 = vmul.f32 0.5, %v2137_v61 }
 0x44c   : > { %v2139_v29 = vsub.f32 1.5, %v2138_v28 }
 0x44e   : > { %v2140_v2 = vmul.f32 %v2913_v38, %v2139_v29 }
 0x450   : > { %v2144_v0 = vsel %vm2143_vm7, %v2913_v38, %v2140_v2 }
 0x451   : > { %2777 = vpush %v2144_v0 }
 0x452   : > { %2779 = vpush %v2409_v7 }
 0x482   : > { %s2778_s8 = spop %2777 }
 0x483   : > { %v2146_v22 = vstv %s2778_s8  ;;  %s2780_s9 = spop %2779 }
 0x484   : > { %v2147_v3 = vmul.f32 %v2146_v22, %v4036_v46  ;;  %v2148_v23 = vmul.f32 %v2146_v22, %v4038_v48  ;;  %v2149_v59 = vmul.f32 %v2146_v22, %v4040_v4  ;;  %s2411_s10 = sadd.f32 1.0, %s2780_s9  ;;  %v2150_v25 = vmul.f32 %v2146_v22, %v4048_v35 }
 0x485   : > { %v2151_v27 = vmul.f32 %v2146_v22, %v4058_v9  ;;  %v2152_v24 = vmul.f32 %v2146_v22, %v4064_v5  ;;  %v2153_v46 = vmul.f32 %v2146_v22, %v4068_v54  ;;  %v2154_v4 = vmul.f32 %v2146_v22, %v4076_v41 }
 0x486   : > { %2163 = vst [vmem:[%s4330_s4] sm:$0xff] %v2147_v3  ;;  %v2412_v48 = vstv %s2411_s10  ;;  %v2155_v35 = vmul.f32 %v2146_v22, %v4046_v20  ;;  %v2156_v9 = vmul.f32 %v2146_v22, %v4052_v58  ;;  %v2157_v5 = vmul.f32 %v2146_v22, %v4056_v32 }
 0x487   : > { %2164 = vst [vmem:[%s4330_s4 + $0x8] sm:$0xff] %v2148_v23  ;;  %2914 = vrsqrt.f32 %v2412_v48  ;;  %v2158_v54 = vmul.f32 %v2146_v22, %v4060_v6  ;;  %v2159_v20 = vmul.f32 %v2146_v22, %v4072_v13  ;;  %v2160_v41 = vmul.f32 %v2146_v22, %v4082_v8 }
 0x488   : > { %2165 = vst [vmem:[%s4330_s4 + $0x10] sm:$0xff] %v2149_v59  ;;  %v2161_v32 = vmul.f32 %v2146_v22, %v4092_v42  ;;  %v2162_v13 = vmul.f32 %v2146_v22, %v4099_v52  ;;  %vm2419_vm9 = vweird.f32 %v2412_v48 }
 0x489   : > { %2166 = vst [vmem:[%s4330_s4 + $0x18] sm:$0xff] %v2150_v25 }
 0x48a   : > { %2167 = vst [vmem:[%s4330_s4 + $0x20] sm:$0xff] %v2151_v27 }
 0x48b   : > { %2168 = vst [vmem:[%s4330_s4 + $0x28] sm:$0xff] %v2152_v24 }
 0x48c   : > { %2169 = vst [vmem:[%s4330_s4 + $0x30] sm:$0xff] %v2153_v46 }
 0x48d   : > { %2170 = vst [vmem:[%s4330_s4 + $0x38] sm:$0xff] %v2154_v4  ;;  %v2915_v58 = vpop.eup %2914 }
 0x48e   : > { %2171 = vst [vmem:[%s4330_s4 + $0x40] sm:$0x3] %v2155_v35  ;;  %v2414_v6 = vmul.f32 %v2915_v58, %v2412_v48  ;;  %vm2420_vm8 = vweird.f32 %v2915_v58 }
 0x48f   : > { %2172 = vst [vmem:[%s4330_s4 + $0x48] sm:$0x3] %v2156_v9  ;;  %vm2421_vm11 = vmor %vm2419_vm9, %vm2420_vm8 }
 0x490   : > { %2173 = vst [vmem:[%s4330_s4 + $0x50] sm:$0x3] %v2157_v5  ;;  %v2415_v8 = vmul.f32 %v2915_v58, %v2414_v6 }
 0x491   : > { %2174 = vst [vmem:[%s4330_s4 + $0x58] sm:$0x3] %v2158_v54 }
 0x492   : > { %2175 = vst [vmem:[%s4330_s4 + $0x60] sm:$0x3] %v2159_v20  ;;  %v2416_v42 = vmul.f32 0.5, %v2415_v8 }
 0x493   : > { %2176 = vst [vmem:[%s4330_s4 + $0x68] sm:$0x3] %v2160_v41 }
 0x494   : > { %2177 = vst [vmem:[%s4330_s4 + $0x70] sm:$0x3] %v2161_v32  ;;  %v2417_v52 = vsub.f32 1.5, %v2416_v42 }
 0x495   : > { %2178 = vst [vmem:[%s4330_s4 + $0x78] sm:$0x3] %v2162_v13 }
 0x496   : > { %v2418_v43 = vmul.f32 %v2915_v58, %v2417_v52 }
 0x498   : > { %v2422_v16 = vsel %vm2421_vm11, %v2915_v58, %v2418_v43 }
 0x499   : > { %2781 = vpush %v2422_v16 }
 0x4ca   : > { %s2782_s29 = spop %2781 }
 0x4cb   : > { %v2424_v63 = vstv %s2782_s29 }
 0x4cc   : > { %v2425_v34 = vmul.f32 %v2424_v63, %v4094_v11  ;;  %v2426_v36 = vmul.f32 %v2424_v63, %v4107_v55  ;;  %v2427_v53 = vmul.f32 %v2424_v63, %v4115_v30  ;;  %v2428_v39 = vmul.f32 %v2424_v63, %v4122_v26 }
 0x4cd   : > { %v2429_v40 = vmul.f32 %v2424_v63, %v4130_v19  ;;  %v2430_v15 = vmul.f32 %v2424_v63, %v4136_v44  ;;  %v2431_v11 = vmul.f32 %v2424_v63, %v4142_v45  ;;  %v2432_v55 = vmul.f32 %v2424_v63, %v4148_v47 }
 0x4ce   : > { %2753 = vst [vmem:[%s4330_s4 + $0x80] sm:$0xff] %v2425_v34  ;;  %v2433_v30 = vmul.f32 %v2424_v63, %v4119_v56  ;;  %v2434_v26 = vmul.f32 %v2424_v63, %v4126_v57  ;;  %v2435_v19 = vmul.f32 %v2424_v63, %v4128_v31  ;;  %v2436_v44 = vmul.f32 %v2424_v63, %v4132_v33 }
 0x4cf   : > { %2754 = vst [vmem:[%s4330_s4 + $0x88] sm:$0xff] %v2426_v36  ;;  %v2437_v56 = vmul.f32 %v2424_v63, %v4155_v10  ;;  %v2438_v57 = vmul.f32 %v2424_v63, %v4160_v60  ;;  %v2439_v31 = vmul.f32 %v2424_v63, %v4165_v62  ;;  %v2440_v33 = vmul.f32 %v2424_v63, %v4170_v12 }
 0x4d0   : > { %2755 = vst [vmem:[%s4330_s4 + $0x90] sm:$0xff] %v2427_v53 }
 0x4d1   : > { %2756 = vst [vmem:[%s4330_s4 + $0x98] sm:$0xff] %v2428_v39 }
 0x4d2   : > { %2757 = vst [vmem:[%s4330_s4 + $0xa0] sm:$0xff] %v2429_v40 }
 0x4d3   : > { %2758 = vst [vmem:[%s4330_s4 + $0xa8] sm:$0xff] %v2430_v15 }
 0x4d4   : > { %2759 = vst [vmem:[%s4330_s4 + $0xb0] sm:$0xff] %v2431_v11 }
 0x4d5   : > { %2760 = vst [vmem:[%s4330_s4 + $0xb8] sm:$0xff] %v2432_v55 }
 0x4d6   : > { %2761 = vst [vmem:[%s4330_s4 + $0xc0] sm:$0x3] %v2433_v30 }
 0x4d7   : > { %2762 = vst [vmem:[%s4330_s4 + $0xc8] sm:$0x3] %v2434_v26 }
 0x4d8   : > { %2763 = vst [vmem:[%s4330_s4 + $0xd0] sm:$0x3] %v2435_v19 }
 0x4d9   : > { %2764 = vst [vmem:[%s4330_s4 + $0xd8] sm:$0x3] %v2436_v44 }
 0x4da   : > { %2765 = vst [vmem:[%s4330_s4 + $0xe0] sm:$0x3] %v2437_v56 }
 0x4db   : > { %2766 = vst [vmem:[%s4330_s4 + $0xe8] sm:$0x3] %v2438_v57 }
 0x4dc   : > { %2767 = vst [vmem:[%s4330_s4 + $0xf0] sm:$0x3] %v2439_v31 }
 0x4dd   : > { %2768 = vst [vmem:[%s4330_s4 + $0xf8] sm:$0x3] %v2440_v33 }
 0x4de PF: > { %s17_s20 = sadd.s32 1, %s2996_s20   ;;  %s4333_s15 = smov %s2980_s16 }
 0x4df   : > { %p14_p1 = scmp.ge.s32.totalorder %s17_s20, 4   ;;  %s4334_s16 = smov %s2984_s17 }
 0x4e0   : > { %s4335_s17 = smov %s3084_s27  ;;  %s4336_s18 = smov %s2992_s19 }
 0x4e1   : > { %s4337_s19 = smov %s4339_s22  ;;  %16 = sbr.rel (!%p14_p1) target bundleno = 4 (0x4), region = 88 }
 0x4e6   :  { %2482 = vsyncpa [#allocation4], 1 }
 0x4e7   :  { %2484 = vsyncpa [#allocation4 + $0x1], 1 }

</bundles_post_ra>
